<compile_context>
chip_gen: v7x
topology: tpu7x:2x2x1
jax: 0.10.0
libtpu: 0.0.40
codegen_flags: <defaults>
</compile_context>

<pallas_src>
import jax
import jax.numpy as jnp
from jax import lax
from jax.experimental import pallas as pl
from jax.experimental.pallas import tpu as pltpu


def _descriptor_kernel(x_ref, w1_ref, shift_ref, w2_ref, b2_ref, out_ref):
    # x_ref    : (1, H+2, W+2, Cin)   zero-padded input (whole image, bf16/f32)
    # w1_ref   : (3, 3, Cin, Cmid)    BN-folded 3x3 conv weights
    # shift_ref: (1, Cmid)  f32       folded conv1 bias + BN shift
    # w2_ref   : (Cmid, Cout)         1x1 conv weight
    # b2_ref   : (1, Cout)  f32       1x1 conv bias
    # out_ref  : (1, TH, W, Cout)
    TH = out_ref.shape[1]
    W = out_ref.shape[2]
    Cout = out_ref.shape[3]
    Cin = x_ref.shape[3]

    t = pl.program_id(1)
    r0 = pl.multiple_of(t * TH, TH)   # first padded input row of this H tile

    # 3x3 conv (pad=1) as 9 MXU matmuls accumulated sequentially in f32.
    # The ky slices are outer-dim row slices (cheap); the kx slices are static
    # sublane offsets (0/1/2) whose repack costs VMEM ld/st, not HBM bytes.
    acc = None
    for ky in range(3):
        for kx in range(3):
            slab = x_ref[0, pl.ds(r0 + ky, TH), pl.ds(kx, W), :]   # (TH, W, Cin)
            part = jnp.dot(slab.reshape(TH * W, Cin), w1_ref[ky, kx, :, :],
                           preferred_element_type=jnp.float32)
            acc = part if acc is None else acc + part              # (TH*W, Cmid)

    # folded conv-bias + BatchNorm shift, then ReLU (f32, VPU)
    h = jnp.maximum(acc + shift_ref[...], 0.0)

    # 1x1 conv == channel matmul (MXU) + bias (f32)
    out = jnp.dot(h.astype(w2_ref.dtype), w2_ref[...],
                  preferred_element_type=jnp.float32) + b2_ref[...]
    out_ref[...] = out.reshape(1, TH, W, Cout).astype(out_ref.dtype)


def _pick_tile_h(H, tile_h, B):
    """Largest divisor of H that is <= tile_h, keeping >= 2 grid steps."""
    th = max(d for d in range(1, H + 1) if H % d == 0 and d <= max(1, tile_h))
    # keep at least 2 units of grid work so both v7x TensorCores stay busy
    while B * (H // th) < 2 and th > 1:
        f = next(f for f in range(2, th + 1) if th % f == 0)
        th //= f
    return th


def point_descriptor(x, w1, b1, gamma, beta, running_mean, running_var,
                     w2, b2, *, eps=1e-5, compute_dtype=jnp.bfloat16,
                     out_dtype=None, tile_h=16,
                     vmem_limit_bytes=64 * 1024 * 1024,
                     input_buffer_count=None):
    """x: (B, H, W, Cin) NHWC.  Returns (B, H, W, Cout) in out_dtype."""
    B, H, W, Cin = x.shape
    Cmid = w1.shape[-1]
    Cout = w2.shape[-1]
    f32 = jnp.float32
    out_dtype = compute_dtype if out_dtype is None else out_dtype

    # ---- host-side folding (plain-JAX glue, all in f32) ---------------------
    scale = (gamma / jnp.sqrt(running_var + eps)).astype(f32)
    shift = ((b1 - running_mean) * scale + beta).astype(f32)     # bias + BN shift
    w1f = (w1.astype(f32) * scale[None, None, None, :]).astype(compute_dtype)

    # zero-padded (NOT kx-stacked) input: 1x HBM bytes; taps are formed in-kernel
    xpad = jnp.pad(x, ((0, 0), (1, 1), (1, 1), (0, 0))).astype(compute_dtype)

    w2c = w2.astype(compute_dtype)
    shift_2d = shift.reshape(1, Cmid)
    b2_2d = b2.astype(f32).reshape(1, Cout)

    th = _pick_tile_h(H, tile_h, B)

    # optional single-/multi-buffering of the per-batch image block (v7x VMEM)
    x_spec_kwargs = {}
    if input_buffer_count is not None:
        x_spec_kwargs["pipeline_mode"] = pl.Buffered(input_buffer_count)

    grid_spec = pltpu.PrefetchScalarGridSpec(
        num_scalar_prefetch=0,
        grid=(B, H // th),
        in_specs=[
            # whole padded image per batch element: constant index across the
            # H-tile axis, so it is DMA'd only once per batch element.
            pl.BlockSpec((1, H + 2, W + 2, Cin), lambda b, t: (b, 0, 0, 0),
                         **x_spec_kwargs),
            pl.BlockSpec((3, 3, Cin, Cmid), lambda b, t: (0, 0, 0, 0)),
            pl.BlockSpec((1, Cmid), lambda b, t: (0, 0)),
            pl.BlockSpec((Cmid, Cout), lambda b, t: (0, 0)),
            pl.BlockSpec((1, Cout), lambda b, t: (0, 0)),
        ],
        out_specs=pl.BlockSpec((1, th, W, Cout), lambda b, t: (b, t, 0, 0)),
    )

    return pl.pallas_call(
        _descriptor_kernel,
        out_shape=jax.ShapeDtypeStruct((B, H, W, Cout), out_dtype),
        grid_spec=grid_spec,
        compiler_params=pltpu.CompilerParams(
            dimension_semantics=("parallel", "parallel"),
            vmem_limit_bytes=vmem_limit_bytes),
    )(xpad, w1f, shift_2d, w2c, b2_2d)


def _reference(x, w1, b1, gamma, beta, rmean, rvar, w2, b2, *,
               eps=1e-5, compute_dtype=jnp.float32):
    """Plain-JAX reference of the PyTorch module's forward (NHWC / HWIO)."""
    f32 = jnp.float32
    xc = x.astype(compute_dtype).astype(f32)
    w1c = w1.astype(compute_dtype).astype(f32)
    w2c = w2.astype(compute_dtype).astype(f32)
    y = lax.conv_general_dilated(
        xc, w1c, window_strides=(1, 1), padding=((1, 1), (1, 1)),
        dimension_numbers=("NHWC", "HWIO", "NHWC"),
        precision=lax.Precision.HIGHEST)
    y = y + b1
    y = (y - rmean) / jnp.sqrt(rvar + eps) * gamma + beta
    y = jnp.maximum(y, 0.0)
    y = y.astype(compute_dtype).astype(f32)
    y = jnp.einsum("bhwc,co->bhwo", y, w2c,
                   precision=lax.Precision.HIGHEST) + b2
    return y


if __name__ == "__main__":
    # Small config consistent with the module (scaled down from 512 -> 256).
    # Cout is a multiple of 128 (lane-dense stores); W multiple of 8 so
    # in-kernel reshapes are layout no-ops; tile_h=16 -> M = TH*W = 256 (MXU).
    B, H, W = 2, 16, 16
    Cin, Cout = 32, 128          # in_channels, out_channels

    key = jax.random.PRNGKey(0)
    keys = jax.random.split(key, 8)

    x = jax.random.normal(keys[0], (B, H, W, Cin), dtype=jnp.float32)

    # Deterministic synthetic parameters (shapes implied by nn.Module __init__).
    w1 = jax.random.normal(keys[1], (3, 3, Cin, Cout), jnp.float32) * 0.1   # Conv2d 3x3 (HWIO)
    b1 = jax.random.normal(keys[2], (Cout,), jnp.float32) * 0.1
    gamma = 1.0 + 0.1 * jax.random.normal(keys[3], (Cout,), jnp.float32)    # BN weight
    beta = 0.1 * jax.random.normal(keys[4], (Cout,), jnp.float32)           # BN bias
    running_mean = 0.1 * jax.random.normal(keys[5], (Cout,), jnp.float32)
    running_var = jnp.abs(1.0 + 0.1 * jax.random.normal(keys[6], (Cout,), jnp.float32))
    w2 = jax.random.normal(keys[7], (Cout, Cout), jnp.float32) * 0.1        # Conv2d 1x1 (I, O)
    b2 = 0.05 * jnp.arange(Cout, dtype=jnp.float32)

    args = (x, w1, b1, gamma, beta, running_mean, running_var, w2, b2)

    # f32 compute + f32 output: tight structural / numerical check.
    out_f32 = jax.block_until_ready(
        point_descriptor(*args, compute_dtype=jnp.float32))
    ref_f32 = _reference(*args, compute_dtype=jnp.float32)
    assert out_f32.shape == (B, H, W, Cout)
    err_f32 = float(jnp.max(jnp.abs(out_f32 - ref_f32)))
    assert jnp.allclose(out_f32, ref_f32, atol=1e-3, rtol=1e-3), err_f32

    # bf16 compute + bf16 output (default performance path): looser tolerance.
    out_bf16 = jax.block_until_ready(point_descriptor(*args))
    assert out_bf16.dtype == jnp.bfloat16
    ref_bf16 = _reference(*args, compute_dtype=jnp.bfloat16)
    assert out_bf16.shape == (B, H, W, Cout)
    err_bf16 = float(jnp.max(jnp.abs(out_bf16.astype(jnp.float32) - ref_bf16)))
    assert jnp.allclose(out_bf16.astype(jnp.float32), ref_bf16,
                        atol=5e-2, rtol=5e-2), err_bf16

    print("KERNEL_OK")
</pallas_src>

<mosaic_0001>
module attributes {stable_mosaic.version = 11 : i64} {
  func.func @_descriptor_kernel(%arg0: i32, %arg1: i32, %arg2: memref<1x18x18x32xf32, #tpu.memory_space<vmem>>, %arg3: memref<3x3x32x128xf32, #tpu.memory_space<vmem>>, %arg4: memref<1x128xf32, #tpu.memory_space<vmem>>, %arg5: memref<128x128xf32, #tpu.memory_space<vmem>>, %arg6: memref<1x128xf32, #tpu.memory_space<vmem>>, %arg7: memref<1x16x16x128xf32, #tpu.memory_space<vmem>>) attributes {dimension_semantics = [#tpu.dimension_semantics<parallel>, #tpu.dimension_semantics<parallel>], iteration_bounds = array<i64: 2, 1>, scalar_prefetch = 0 : i64, scratch_operands = 0 : i64, tpu.core_type = #tpu.core_type<tc>, window_params = [{transform_indices = @transform_0, window_bounds = array<i64: 1, 18, 18, 32>}, {pipeline_mode = #tpu.pipeline_mode<synchronous>, transform_indices = @transform_1, window_bounds = array<i64: 3, 3, 32, 128>}, {pipeline_mode = #tpu.pipeline_mode<synchronous>, transform_indices = @transform_2, window_bounds = array<i64: 1, 128>}, {pipeline_mode = #tpu.pipeline_mode<synchronous>, transform_indices = @transform_3, window_bounds = array<i64: 128, 128>}, {pipeline_mode = #tpu.pipeline_mode<synchronous>, transform_indices = @transform_4, window_bounds = array<i64: 1, 128>}, {transform_indices = @transform_5, window_bounds = array<i64: 1, 16, 16, 128>}]} {
    %c16_i32 = arith.constant 16 : i32
    %0 = arith.muli %arg1, %c16_i32 : i32
    %1 = tpu.assume_multiple %0, 16 : i32
    %c0_i32 = arith.constant 0 : i32
    %2 = arith.addi %1, %c0_i32 : i32
    %c0 = arith.constant 0 : index
    %3 = arith.index_cast %2 : i32 to index
    %c0_0 = arith.constant 0 : index
    %c0_1 = arith.constant 0 : index
    %4 = vector.load %arg2[%c0, %3, %c0_0, %c0_1] : memref<1x18x18x32xf32, #tpu.memory_space<vmem>>, vector<1x16x16x32xf32>
    %5 = vector.shape_cast %4 : vector<1x16x16x32xf32> to vector<16x16x32xf32>
    %6 = vector.shape_cast %5 : vector<16x16x32xf32> to vector<256x32xf32>
    %c0_2 = arith.constant 0 : index
    %c0_3 = arith.constant 0 : index
    %c0_4 = arith.constant 0 : index
    %c0_5 = arith.constant 0 : index
    %7 = vector.load %arg3[%c0_2, %c0_3, %c0_4, %c0_5] : memref<3x3x32x128xf32, #tpu.memory_space<vmem>>, vector<1x1x32x128xf32>
    %8 = vector.shape_cast %7 : vector<1x1x32x128xf32> to vector<32x128xf32>
    %cst = arith.constant dense<0.000000e+00> : vector<256x128xf32>
    %9 = tpu.matmul %6, %8, %cst {dimension_numbers = #tpu.dot_dimension_numbers<[1], [0], [0], [1], [0, 0, 1, 1], [], []>} : vector<256x32xf32>, vector<32x128xf32>, vector<256x128xf32> -> vector<256x128xf32>
    %c0_i32_6 = arith.constant 0 : i32
    %10 = arith.addi %1, %c0_i32_6 : i32
    %c0_7 = arith.constant 0 : index
    %11 = arith.index_cast %10 : i32 to index
    %c1 = arith.constant 1 : index
    %c0_8 = arith.constant 0 : index
    %12 = vector.load %arg2[%c0_7, %11, %c1, %c0_8] : memref<1x18x18x32xf32, #tpu.memory_space<vmem>>, vector<1x16x16x32xf32>
    %13 = vector.shape_cast %12 : vector<1x16x16x32xf32> to vector<16x16x32xf32>
    %14 = vector.shape_cast %13 : vector<16x16x32xf32> to vector<256x32xf32>
    %c0_9 = arith.constant 0 : index
    %c1_10 = arith.constant 1 : index
    %c0_11 = arith.constant 0 : index
    %c0_12 = arith.constant 0 : index
    %15 = vector.load %arg3[%c0_9, %c1_10, %c0_11, %c0_12] : memref<3x3x32x128xf32, #tpu.memory_space<vmem>>, vector<1x1x32x128xf32>
    %16 = vector.shape_cast %15 : vector<1x1x32x128xf32> to vector<32x128xf32>
    %cst_13 = arith.constant dense<0.000000e+00> : vector<256x128xf32>
    %17 = tpu.matmul %14, %16, %cst_13 {dimension_numbers = #tpu.dot_dimension_numbers<[1], [0], [0], [1], [0, 0, 1, 1], [], []>} : vector<256x32xf32>, vector<32x128xf32>, vector<256x128xf32> -> vector<256x128xf32>
    %18 = arith.addf %9, %17 : vector<256x128xf32>
    %c0_i32_14 = arith.constant 0 : i32
    %19 = arith.addi %1, %c0_i32_14 : i32
    %c0_15 = arith.constant 0 : index
    %20 = arith.index_cast %19 : i32 to index
    %c2 = arith.constant 2 : index
    %c0_16 = arith.constant 0 : index
    %21 = vector.load %arg2[%c0_15, %20, %c2, %c0_16] : memref<1x18x18x32xf32, #tpu.memory_space<vmem>>, vector<1x16x16x32xf32>
    %22 = vector.shape_cast %21 : vector<1x16x16x32xf32> to vector<16x16x32xf32>
    %23 = vector.shape_cast %22 : vector<16x16x32xf32> to vector<256x32xf32>
    %c0_17 = arith.constant 0 : index
    %c2_18 = arith.constant 2 : index
    %c0_19 = arith.constant 0 : index
    %c0_20 = arith.constant 0 : index
    %24 = vector.load %arg3[%c0_17, %c2_18, %c0_19, %c0_20] : memref<3x3x32x128xf32, #tpu.memory_space<vmem>>, vector<1x1x32x128xf32>
    %25 = vector.shape_cast %24 : vector<1x1x32x128xf32> to vector<32x128xf32>
    %cst_21 = arith.constant dense<0.000000e+00> : vector<256x128xf32>
    %26 = tpu.matmul %23, %25, %cst_21 {dimension_numbers = #tpu.dot_dimension_numbers<[1], [0], [0], [1], [0, 0, 1, 1], [], []>} : vector<256x32xf32>, vector<32x128xf32>, vector<256x128xf32> -> vector<256x128xf32>
    %27 = arith.addf %18, %26 : vector<256x128xf32>
    %c1_i32 = arith.constant 1 : i32
    %28 = arith.addi %1, %c1_i32 : i32
    %c0_22 = arith.constant 0 : index
    %29 = arith.index_cast %28 : i32 to index
    %c0_23 = arith.constant 0 : index
    %c0_24 = arith.constant 0 : index
    %30 = vector.load %arg2[%c0_22, %29, %c0_23, %c0_24] : memref<1x18x18x32xf32, #tpu.memory_space<vmem>>, vector<1x16x16x32xf32>
    %31 = vector.shape_cast %30 : vector<1x16x16x32xf32> to vector<16x16x32xf32>
    %32 = vector.shape_cast %31 : vector<16x16x32xf32> to vector<256x32xf32>
    %c1_25 = arith.constant 1 : index
    %c0_26 = arith.constant 0 : index
    %c0_27 = arith.constant 0 : index
    %c0_28 = arith.constant 0 : index
    %33 = vector.load %arg3[%c1_25, %c0_26, %c0_27, %c0_28] : memref<3x3x32x128xf32, #tpu.memory_space<vmem>>, vector<1x1x32x128xf32>
    %34 = vector.shape_cast %33 : vector<1x1x32x128xf32> to vector<32x128xf32>
    %cst_29 = arith.constant dense<0.000000e+00> : vector<256x128xf32>
    %35 = tpu.matmul %32, %34, %cst_29 {dimension_numbers = #tpu.dot_dimension_numbers<[1], [0], [0], [1], [0, 0, 1, 1], [], []>} : vector<256x32xf32>, vector<32x128xf32>, vector<256x128xf32> -> vector<256x128xf32>
    %36 = arith.addf %27, %35 : vector<256x128xf32>
    %c1_i32_30 = arith.constant 1 : i32
    %37 = arith.addi %1, %c1_i32_30 : i32
    %c0_31 = arith.constant 0 : index
    %38 = arith.index_cast %37 : i32 to index
    %c1_32 = arith.constant 1 : index
    %c0_33 = arith.constant 0 : index
    %39 = vector.load %arg2[%c0_31, %38, %c1_32, %c0_33] : memref<1x18x18x32xf32, #tpu.memory_space<vmem>>, vector<1x16x16x32xf32>
    %40 = vector.shape_cast %39 : vector<1x16x16x32xf32> to vector<16x16x32xf32>
    %41 = vector.shape_cast %40 : vector<16x16x32xf32> to vector<256x32xf32>
    %c1_34 = arith.constant 1 : index
    %c1_35 = arith.constant 1 : index
    %c0_36 = arith.constant 0 : index
    %c0_37 = arith.constant 0 : index
    %42 = vector.load %arg3[%c1_34, %c1_35, %c0_36, %c0_37] : memref<3x3x32x128xf32, #tpu.memory_space<vmem>>, vector<1x1x32x128xf32>
    %43 = vector.shape_cast %42 : vector<1x1x32x128xf32> to vector<32x128xf32>
    %cst_38 = arith.constant dense<0.000000e+00> : vector<256x128xf32>
    %44 = tpu.matmul %41, %43, %cst_38 {dimension_numbers = #tpu.dot_dimension_numbers<[1], [0], [0], [1], [0, 0, 1, 1], [], []>} : vector<256x32xf32>, vector<32x128xf32>, vector<256x128xf32> -> vector<256x128xf32>
    %45 = arith.addf %36, %44 : vector<256x128xf32>
    %c1_i32_39 = arith.constant 1 : i32
    %46 = arith.addi %1, %c1_i32_39 : i32
    %c0_40 = arith.constant 0 : index
    %47 = arith.index_cast %46 : i32 to index
    %c2_41 = arith.constant 2 : index
    %c0_42 = arith.constant 0 : index
    %48 = vector.load %arg2[%c0_40, %47, %c2_41, %c0_42] : memref<1x18x18x32xf32, #tpu.memory_space<vmem>>, vector<1x16x16x32xf32>
    %49 = vector.shape_cast %48 : vector<1x16x16x32xf32> to vector<16x16x32xf32>
    %50 = vector.shape_cast %49 : vector<16x16x32xf32> to vector<256x32xf32>
    %c1_43 = arith.constant 1 : index
    %c2_44 = arith.constant 2 : index
    %c0_45 = arith.constant 0 : index
    %c0_46 = arith.constant 0 : index
    %51 = vector.load %arg3[%c1_43, %c2_44, %c0_45, %c0_46] : memref<3x3x32x128xf32, #tpu.memory_space<vmem>>, vector<1x1x32x128xf32>
    %52 = vector.shape_cast %51 : vector<1x1x32x128xf32> to vector<32x128xf32>
    %cst_47 = arith.constant dense<0.000000e+00> : vector<256x128xf32>
    %53 = tpu.matmul %50, %52, %cst_47 {dimension_numbers = #tpu.dot_dimension_numbers<[1], [0], [0], [1], [0, 0, 1, 1], [], []>} : vector<256x32xf32>, vector<32x128xf32>, vector<256x128xf32> -> vector<256x128xf32>
    %54 = arith.addf %45, %53 : vector<256x128xf32>
    %c2_i32 = arith.constant 2 : i32
    %55 = arith.addi %1, %c2_i32 : i32
    %c0_48 = arith.constant 0 : index
    %56 = arith.index_cast %55 : i32 to index
    %c0_49 = arith.constant 0 : index
    %c0_50 = arith.constant 0 : index
    %57 = vector.load %arg2[%c0_48, %56, %c0_49, %c0_50] : memref<1x18x18x32xf32, #tpu.memory_space<vmem>>, vector<1x16x16x32xf32>
    %58 = vector.shape_cast %57 : vector<1x16x16x32xf32> to vector<16x16x32xf32>
    %59 = vector.shape_cast %58 : vector<16x16x32xf32> to vector<256x32xf32>
    %c2_51 = arith.constant 2 : index
    %c0_52 = arith.constant 0 : index
    %c0_53 = arith.constant 0 : index
    %c0_54 = arith.constant 0 : index
    %60 = vector.load %arg3[%c2_51, %c0_52, %c0_53, %c0_54] : memref<3x3x32x128xf32, #tpu.memory_space<vmem>>, vector<1x1x32x128xf32>
    %61 = vector.shape_cast %60 : vector<1x1x32x128xf32> to vector<32x128xf32>
    %cst_55 = arith.constant dense<0.000000e+00> : vector<256x128xf32>
    %62 = tpu.matmul %59, %61, %cst_55 {dimension_numbers = #tpu.dot_dimension_numbers<[1], [0], [0], [1], [0, 0, 1, 1], [], []>} : vector<256x32xf32>, vector<32x128xf32>, vector<256x128xf32> -> vector<256x128xf32>
    %63 = arith.addf %54, %62 : vector<256x128xf32>
    %c2_i32_56 = arith.constant 2 : i32
    %64 = arith.addi %1, %c2_i32_56 : i32
    %c0_57 = arith.constant 0 : index
    %65 = arith.index_cast %64 : i32 to index
    %c1_58 = arith.constant 1 : index
    %c0_59 = arith.constant 0 : index
    %66 = vector.load %arg2[%c0_57, %65, %c1_58, %c0_59] : memref<1x18x18x32xf32, #tpu.memory_space<vmem>>, vector<1x16x16x32xf32>
    %67 = vector.shape_cast %66 : vector<1x16x16x32xf32> to vector<16x16x32xf32>
    %68 = vector.shape_cast %67 : vector<16x16x32xf32> to vector<256x32xf32>
    %c2_60 = arith.constant 2 : index
    %c1_61 = arith.constant 1 : index
    %c0_62 = arith.constant 0 : index
    %c0_63 = arith.constant 0 : index
    %69 = vector.load %arg3[%c2_60, %c1_61, %c0_62, %c0_63] : memref<3x3x32x128xf32, #tpu.memory_space<vmem>>, vector<1x1x32x128xf32>
    %70 = vector.shape_cast %69 : vector<1x1x32x128xf32> to vector<32x128xf32>
    %cst_64 = arith.constant dense<0.000000e+00> : vector<256x128xf32>
    %71 = tpu.matmul %68, %70, %cst_64 {dimension_numbers = #tpu.dot_dimension_numbers<[1], [0], [0], [1], [0, 0, 1, 1], [], []>} : vector<256x32xf32>, vector<32x128xf32>, vector<256x128xf32> -> vector<256x128xf32>
    %72 = arith.addf %63, %71 : vector<256x128xf32>
    %c2_i32_65 = arith.constant 2 : i32
    %73 = arith.addi %1, %c2_i32_65 : i32
    %c0_66 = arith.constant 0 : index
    %74 = arith.index_cast %73 : i32 to index
    %c2_67 = arith.constant 2 : index
    %c0_68 = arith.constant 0 : index
    %75 = vector.load %arg2[%c0_66, %74, %c2_67, %c0_68] : memref<1x18x18x32xf32, #tpu.memory_space<vmem>>, vector<1x16x16x32xf32>
    %76 = vector.shape_cast %75 : vector<1x16x16x32xf32> to vector<16x16x32xf32>
    %77 = vector.shape_cast %76 : vector<16x16x32xf32> to vector<256x32xf32>
    %c2_69 = arith.constant 2 : index
    %c2_70 = arith.constant 2 : index
    %c0_71 = arith.constant 0 : index
    %c0_72 = arith.constant 0 : index
    %78 = vector.load %arg3[%c2_69, %c2_70, %c0_71, %c0_72] : memref<3x3x32x128xf32, #tpu.memory_space<vmem>>, vector<1x1x32x128xf32>
    %79 = vector.shape_cast %78 : vector<1x1x32x128xf32> to vector<32x128xf32>
    %cst_73 = arith.constant dense<0.000000e+00> : vector<256x128xf32>
    %80 = tpu.matmul %77, %79, %cst_73 {dimension_numbers = #tpu.dot_dimension_numbers<[1], [0], [0], [1], [0, 0, 1, 1], [], []>} : vector<256x32xf32>, vector<32x128xf32>, vector<256x128xf32> -> vector<256x128xf32>
    %81 = arith.addf %72, %80 : vector<256x128xf32>
    %c0_74 = arith.constant 0 : index
    %c0_75 = arith.constant 0 : index
    %82 = vector.load %arg4[%c0_74, %c0_75] : memref<1x128xf32, #tpu.memory_space<vmem>>, vector<1x128xf32>
    %83 = vector.broadcast %82 : vector<1x128xf32> to vector<256x128xf32>
    %84 = arith.addf %81, %83 : vector<256x128xf32>
    %cst_76 = arith.constant 0.000000e+00 : f32
    %85 = vector.broadcast %cst_76 : f32 to vector<256x128xf32>
    %86 = arith.maximumf %84, %85 : vector<256x128xf32>
    %c0_77 = arith.constant 0 : index
    %c0_78 = arith.constant 0 : index
    %87 = vector.load %arg5[%c0_77, %c0_78] : memref<128x128xf32, #tpu.memory_space<vmem>>, vector<128x128xf32>
    %cst_79 = arith.constant dense<0.000000e+00> : vector<256x128xf32>
    %88 = tpu.matmul %86, %87, %cst_79 {dimension_numbers = #tpu.dot_dimension_numbers<[1], [0], [0], [1], [0, 0, 1, 1], [], []>} : vector<256x128xf32>, vector<128x128xf32>, vector<256x128xf32> -> vector<256x128xf32>
    %c0_80 = arith.constant 0 : index
    %c0_81 = arith.constant 0 : index
    %89 = vector.load %arg6[%c0_80, %c0_81] : memref<1x128xf32, #tpu.memory_space<vmem>>, vector<1x128xf32>
    %90 = vector.broadcast %89 : vector<1x128xf32> to vector<256x128xf32>
    %91 = arith.addf %88, %90 : vector<256x128xf32>
    %92 = vector.shape_cast %91 : vector<256x128xf32> to vector<1x16x16x128xf32>
    %c0_82 = arith.constant 0 : index
    %c0_83 = arith.constant 0 : index
    %c0_84 = arith.constant 0 : index
    %c0_85 = arith.constant 0 : index
    %93 = vector.load %arg7[%c0_82, %c0_83, %c0_84, %c0_85] : memref<1x16x16x128xf32, #tpu.memory_space<vmem>>, vector<1x16x16x128xf32>
    tpu.vector_store %arg7[%c0_82, %c0_83, %c0_84, %c0_85], %92 {strides = array<i32>} : memref<1x16x16x128xf32, #tpu.memory_space<vmem>>, vector<1x16x16x128xf32>,
    return
  }
  func.func @transform_0(%arg0: i32, %arg1: i32) -> (i32, i32, i32, i32) {
    %c0_i32 = arith.constant 0 : i32
    %c0_i32_0 = arith.constant 0 : i32
    %c0_i32_1 = arith.constant 0 : i32
    %c0_i32_2 = arith.constant 0 : i32
    return %arg0, %c0_i32, %c0_i32_0, %c0_i32_1 : i32, i32, i32, i32
  }
  func.func @transform_1(%arg0: i32, %arg1: i32) -> (i32, i32, i32, i32) {
    %c0_i32 = arith.constant 0 : i32
    %c0_i32_0 = arith.constant 0 : i32
    %c0_i32_1 = arith.constant 0 : i32
    %c0_i32_2 = arith.constant 0 : i32
    %c0_i32_3 = arith.constant 0 : i32
    return %c0_i32, %c0_i32_0, %c0_i32_1, %c0_i32_2 : i32, i32, i32, i32
  }
  func.func @transform_2(%arg0: i32, %arg1: i32) -> (i32, i32) {
    %c0_i32 = arith.constant 0 : i32
    %c0_i32_0 = arith.constant 0 : i32
    %c0_i32_1 = arith.constant 0 : i32
    return %c0_i32, %c0_i32_0 : i32, i32
  }
  func.func @transform_3(%arg0: i32, %arg1: i32) -> (i32, i32) {
    %c0_i32 = arith.constant 0 : i32
    %c0_i32_0 = arith.constant 0 : i32
    %c0_i32_1 = arith.constant 0 : i32
    return %c0_i32, %c0_i32_0 : i32, i32
  }
  func.func @transform_4(%arg0: i32, %arg1: i32) -> (i32, i32) {
    %c0_i32 = arith.constant 0 : i32
    %c0_i32_0 = arith.constant 0 : i32
    %c0_i32_1 = arith.constant 0 : i32
    return %c0_i32, %c0_i32_0 : i32, i32
  }
  func.func @transform_5(%arg0: i32, %arg1: i32) -> (i32, i32, i32, i32) {
    %c0_i32 = arith.constant 0 : i32
    %c0_i32_0 = arith.constant 0 : i32
    %c0_i32_1 = arith.constant 0 : i32
    return %arg0, %arg1, %c0_i32, %c0_i32_0 : i32, i32, i32, i32
  }
}

</mosaic_0001>

<bundles_post_ra>
// kernel: tpu_custom_call.1
= control target key start
LH: loop header
LB: loop body
LE: loop exit
PB: predicated region body
PF: predicated region fallthrough
CT: control target
= control target key end

     0   :  { %10 = vsyncpa [#allocation3], 0  ;;  %s7826_s0 = inlined_call_operand.hbm [shape: f32[2,18,18,32], index: 0, kind: input, shape index: {}]   ;;  %s7827_s1 = inlined_call_operand.hbm [shape: f32[3,3,32,128], index: 1, kind: input, shape index: {}]   ;;  %s7828_s2 = inlined_call_operand.hbm [shape: f32[1,128], index: 2, kind: input, shape index: {}]   ;;  %s7829_s3 = inlined_call_operand.hbm [shape: f32[128,128], index: 3, kind: input, shape index: {}]   ;;  %s7830_s4 = inlined_call_operand.hbm [shape: f32[1,128], index: 4, kind: input, shape index: {}]   ;;  %s7831_s5 = inlined_call_operand.hbm [shape: f32[2,16,16,128], index: 5, kind: output, shape index: {}]  }
   0x1   :  { %12 = vsyncpa [#allocation3 + $0x1], 0 }
   0x2   :  { %13 = vsyncpa [#allocation6], 0 }
   0x3   :  { %14 = vsyncpa [#allocation9], 0 }
   0x4   :  { %15 = vsyncpa [#allocation4], 0 }
   0x5   :  { %17 = vsyncpa [#allocation4 + $0x1], 0  ;;  %s6470_s18 = smov 0   ;;  %s6472_s19 = smov 0  }
   0x6   :  { %s6474_s20 = smov 0   ;;  %s6476_s21 = smov 0  }
   0x7   :  { %s6478_s22 = smov 0   ;;  %s6480_s23 = smov 0  }
   0x8 LB: > { %7886 = sst [smem:[#allocation16_spill]] %s6408_s18  ;;  %s4267_s24 = sadd.s32 4294967295, %s6428_s23   ;;  %s6428_s23 = sphi %s6480_s23, %s23_s23   ;;  %s6424_s22 = sphi %s6478_s22, %s7995_s22   ;;  %s6420_s21 = sphi %s6476_s21, %s7994_s21   ;;  %s6416_s20 = sphi %s6474_s20, %s7993_s20   ;;  %s6412_s19 = sphi %s6472_s19, %s7992_s19   ;;  %s6408_s18 = sphi %s6470_s18, %s7991_s18  }
   0x9   : > { %s4268_s25 = sadd.s32 4294967294, %s6428_s23   ;;  %p55_p0 = scmp.ne.s32.totalorder %s6412_s19, %s6408_s18 }
   0xa   : > { %p6504_p1 = scmp.eq.s32.totalorder %s4267_s24, 0  ;;  %p6508_p2 = scmp.eq.s32.totalorder %s4267_s24, 1 }
   0xb   : > { %p171_p3 = scmp.eq.s32.totalorder %s4268_s25, 1  ;;  %p4269_p5 = scmp.ge.s32.totalorder %s6428_s23, 1 }
   0xc   : > { %s7887_s26 = scalar_select %p6504_p1, 1, 0 }
   0xd   : > { %s7888_s27 = scalar_select %p6508_p2, 1, 0 }
   0xe   : > { %p6514_p4 = por %p6504_p1, %p55_p0  ;;  %p6519_p6 = por %p171_p3, %p55_p0 }
   0xf   : > { %p178_p7 = scmp.lt.s32.totalorder %s6428_s23, 3  ;;  %s6430_s6 = smov [#allocation5]  }
  0x10   : > { %s7889_s28 = scalar_select %p6514_p4, 1, 0 }
  0x11   : > { %s7890_s29 = scalar_select %p6519_p6, 1, 0 }
  0x12   : > { %p6524_p8 = pnand %p4269_p5, %p178_p7  ;;  %s190_s7 = sshll.u32 %s6430_s6, 4  ;;  %s6528_s7 = int_to_ptr.vmem [resolvable:$true] %s190_s7 }
  0x13   : > { %7891 = sst [smem:[#allocation17_spill]] %s7890_s29  ;;  %s6431_s9 = smov [#allocation8]  }
  0x14   : > { %s7892_s30 = scalar_select %p6524_p8, 1, 0 }
  0x15   : > { %p6109_p9 = pneg %p6524_p8  ;;  %s214_s10 = sshll.u32 %s6431_s9, 4  ;;  %s6539_s10 = int_to_ptr.vmem [resolvable:$true] %s214_s10 }
  0x16   : > { %s6432_s11 = smov [#allocation7]   ;;  %s6196_s15 = scalar_lea.hbm %s7827_s1, 4608 }
  0x17   : > { %p6535_p11 = pnand %p6109_p9, %p6504_p1  ;;  %s6541_s12 = sshll.u32 %s6432_s11, 4  ;;  %s205_s12 = int_to_ptr.vmem [resolvable:$true] %s6541_s12 }
  0x18   : > { %p6197_p12 = scmp.ne.s32.totalorder %s7827_s1, %s6196_s15  ;;  %p6203_p5 = scmp.lt.u32.totalorder %s6196_s15, %s7827_s1 }
  0x19   : > { %p6551_p13 = pneg %p6535_p11 }
  0x1b   : > { %p6199_p0 = pnand %p6551_p13, %p6197_p12 }
  0x1d   : > { %p6200_p3 = pneg %p6199_p0 }
  0x1f   : > { %p6205_p7 = pnand %p6203_p5, %p6200_p3 }
  0x21   : > { %6208 = shalt.err (!%p6205_p7)
}
  0x22   : > { %s6209_s9 = scalar_lea.vmem %s6528_s7, 4608  ;;  %p6217_p1 = scmp.lt.s32.totalorder %s6528_s7, %s6528_s7 }
  0x23   : > { %p6210_p9 = scmp.ne.s32.totalorder %s6528_s7, %s6209_s9  ;;  %p6218_p4 = scmp.lt.s32.totalorder %s6209_s9, %s6209_s9 }
  0x25   : > { %p6212_p10 = pnand %p6210_p9, %p6551_p13  ;;  %p6219_p12 = por %p6218_p4, %p6217_p1 }
  0x27   : > { %p6213_p6 = pneg %p6212_p10 }
  0x29   : > { %p6220_p0 = pnand %p6219_p12, %p6213_p6 }
  0x2b   : > { %6223 = shalt.err (!%p6220_p0)
}
  0x2c   : > { %s6433_s11 = smov 128   ;;  %s6434_s13 = smov 8  }
  0x2d   : > { %6112 = dma.hbm_to_vmem [thread:$0]  (!%p6535_p11), %s7827_s1, 4608, %s6528_s7, [#allocation6], %s6433_s11, %s6433_s11, %s6434_s13  }
  0x2e   : > { %s6224_s25 = scalar_lea.hbm %s7829_s3, 2048 }
  0x2f   : > { %p6225_p1 = scmp.ne.s32.totalorder %s7829_s3, %s6224_s25  ;;  %p6231_p10 = scmp.lt.u32.totalorder %s6224_s25, %s7829_s3 }
  0x31   : > { %p6227_p4 = pnand %p6225_p1, %p6551_p13 }
  0x33   : > { %p6228_p6 = pneg %p6227_p4 }
  0x35   : > { %p6233_p3 = pnand %p6231_p10, %p6228_p6 }
  0x37   : > { %6236 = shalt.err (!%p6233_p3)
}
  0x38   : > { %s6237_s7 = scalar_lea.vmem %s6539_s10, 2048  ;;  %p6245_p12 = scmp.lt.s32.totalorder %s6539_s10, %s6539_s10 }
  0x39   : > { %p6238_p5 = scmp.ne.s32.totalorder %s6539_s10, %s6237_s7  ;;  %p6246_p0 = scmp.lt.s32.totalorder %s6237_s7, %s6237_s7 }
  0x3b   : > { %p6240_p7 = pnand %p6238_p5, %p6551_p13  ;;  %p6247_p1 = por %p6246_p0, %p6245_p12 }
  0x3d   : > { %p6241_p9 = pneg %p6240_p7 }
  0x3f   : > { %p6248_p4 = pnand %p6247_p1, %p6241_p9 }
  0x41   : > { %6251 = shalt.err (!%p6248_p4)
}
  0x42   : > { %6118 = dma.hbm_to_vmem [thread:$0]  (!%p6535_p11), %s7829_s3, 2048, %s6539_s10, [#allocation9], %s6433_s11, %s6433_s11, %s6434_s13  }
  0x43   : > { %s6252_s16 = scalar_lea.hbm %s7828_s2, 16 }
  0x44   : > { %p6253_p6 = scmp.ne.s32.totalorder %s7828_s2, %s6252_s16  ;;  %p6259_p5 = scmp.lt.u32.totalorder %s6252_s16, %s7828_s2 }
  0x46   : > { %p6255_p10 = pnand %p6253_p6, %p6551_p13 }
  0x48   : > { %p6256_p3 = pneg %p6255_p10 }
  0x4a   : > { %p6261_p7 = pnand %p6259_p5, %p6256_p3 }
  0x4c   : > { %6264 = shalt.err (!%p6261_p7)
}
  0x4d   : > { %s6265_s7 = scalar_lea.vmem %s205_s12, 16  ;;  %s6272_s10 = scalar_lea.vmem %s205_s12, 32 }
  0x4e   : > { %p6266_p9 = scmp.ne.s32.totalorder %s205_s12, %s6265_s7  ;;  %p6273_p1 = scmp.lt.s32.totalorder %s205_s12, %s205_s12 }
  0x4f   : > { %p6274_p4 = scmp.lt.s32.totalorder %s6272_s10, %s6265_s7 }
  0x50   : > { %p6268_p12 = pnand %p6266_p9, %p6551_p13 }
  0x51   : > { %p6275_p8 = por %p6274_p4, %p6273_p1 }
  0x52   : > { %p6269_p0 = pneg %p6268_p12 }
  0x54   : > { %p6276_p2 = pnand %p6275_p8, %p6269_p0 }
  0x56   : > { %6279 = shalt.err (!%p6276_p2)
}
  0x57   : > { %6115 = dma.hbm_to_vmem [thread:$0]  (!%p6535_p11), %s7828_s2, 16, %s205_s12, [#allocation6]  }
  0x58   : > { %s6435_s14 = smov [#allocation10]   ;;  %s6280_s25 = scalar_lea.hbm %s7830_s4, 16 }
  0x59   : > { %s228_s15 = sshll.u32 %s6435_s14, 4  ;;  %p6281_p6 = scmp.ne.s32.totalorder %s7830_s4, %s6280_s25  ;;  %s229_s15 = int_to_ptr.vmem [resolvable:$true] %s228_s15 }
  0x5a   : > { %p6287_p10 = scmp.lt.u32.totalorder %s6280_s25, %s7830_s4 }
  0x5b   : > { %p6283_p2 = pnand %p6281_p6, %p6551_p13 }
  0x5d   : > { %p6284_p8 = pneg %p6283_p2 }
  0x5f   : > { %p6289_p3 = pnand %p6287_p10, %p6284_p8 }
  0x61   : > { %6292 = shalt.err (!%p6289_p3)
}
  0x62   : > { %s6293_s12 = scalar_lea.vmem %s229_s15, 16  ;;  %s6300_s18 = scalar_lea.vmem %s229_s15, 32 }
  0x63   : > { %p6294_p5 = scmp.ne.s32.totalorder %s229_s15, %s6293_s12  ;;  %p6301_p12 = scmp.lt.s32.totalorder %s229_s15, %s229_s15 }
  0x64   : > { %p6302_p0 = scmp.lt.s32.totalorder %s6300_s18, %s6293_s12 }
  0x65   : > { %p6296_p7 = pnand %p6294_p5, %p6551_p13 }
  0x66   : > { %p6303_p1 = por %p6302_p0, %p6301_p12 }
  0x67   : > { %p6297_p9 = pneg %p6296_p7 }
  0x69   : > { %p6304_p4 = pnand %p6303_p1, %p6297_p9 }
  0x6b   : > { %6307 = shalt.err (!%p6304_p4)
}
  0x6c   : > { %6121 = dma.hbm_to_vmem [thread:$0]  (!%p6535_p11), %s7830_s4, 16, %s229_s15, [#allocation9]  }
  0x6d   : > { %s35_s24 = sadd.s32 1, %s6424_s22  ;;  %s42_s16 = sadd.s32 1, %s6416_s20 }
  0x6e   : > { %p37_p13 = scmp.ge.s32.totalorder %s35_s24, 2  ;;  %p49_p6 = scmp.ne.s32.totalorder %s6416_s20, %s6412_s19 }
  0x6f   : > { %p50_p2 = scmp.eq.s32.totalorder %s6428_s23, 0  ;;  %p6134_p8 = scmp.lt.s32.totalorder %s6428_s23, 2 }
  0x70   : > { %s7997_s24 = smov (%p37_p13, %s35_s24), 0  ;;  %p7895_p3 = scmp.ne.s32.totalorder %s7888_s27, 0 }
  0x71   : > { %p51_p10 = por %p50_p2, %p49_p6  ;;  %s39_s17 = ssub.s32 %s6424_s22, %s7997_s24 }
  0x72   : > { %p6648_p5 = por %p7895_p3, %p49_p6  ;;  %s239_s25 = sand.u32 1, %s6416_s20  }
  0x73   : > { %p40_p7 = scmp.eq.s32.totalorder %s39_s17, 0  ;;  %s6086_s15 = smul.u32 432, %s239_s25 }
  0x74   : > { %p6655_p11 = pnand %p6134_p8, %p51_p10  ;;  %s6087_s7 = smul.u32 6912, %s6424_s22 }
  0x75   : > { %s6660_s9 = scalar_select %p40_p7, %s6416_s20, %s42_s16  }
  0x76   : > { %s243_s10 = scalar_lea.vmem [#allocation2], %s6086_s15  ;;  %s6666_s29 = scalar_lea.hbm %s7826_s0, %s6087_s7 }
  0x77   : > { %s250_s12 = sshll.u32 %s243_s10, 4  ;;  %s6670_s14 = scalar_lea.sflag [#allocation3], %s239_s25  ;;  %s6668_s12 = int_to_ptr.vmem [resolvable:$true] %s250_s12 }
  0x78   : > { %s6308_s17 = scalar_lea.hbm %s6666_s29, 6912  ;;  %p6310_p12 = pneg %p6655_p11 }
  0x79   : > { %p6309_p9 = scmp.ne.s32.totalorder %s6666_s29, %s6308_s17  ;;  %s6313_s7 = scalar_lea.hbm %s7826_s0, 13824 }
  0x7a   : > { %p6314_p4 = scmp.lt.u32.totalorder %s6666_s29, %s7826_s0  ;;  %p6315_p13 = scmp.lt.u32.totalorder %s6313_s7, %s6308_s17 }
  0x7b   : > { %p6311_p0 = pnand %p6310_p12, %p6309_p9  ;;  %p6317_p2 = scmp.lt.u32.totalorder %s6308_s17, %s6666_s29 }
  0x7c   : > { %p6316_p6 = por %p6315_p13, %p6314_p4 }
  0x7d   : > { %p6312_p1 = pneg %p6311_p0 }
  0x7e   : > { %p6318_p8 = por %p6317_p2, %p6316_p6 }
  0x80   : > { %p6319_p10 = pnand %p6318_p8, %p6312_p1 }
  0x82   : > { %6322 = shalt.err (!%p6319_p10)
}
  0x83   : > { %s6323_s25 = scalar_lea.vmem %s6668_s12, 6912  ;;  %s6436_s18 = smov [#allocation2]  }
  0x84   : > { %p6324_p3 = scmp.ne.s32.totalorder %s6668_s12, %s6323_s25  ;;  %s6328_s16 = sshll.u32 %s6436_s18, 4  ;;  %s6329_s16 = int_to_ptr.vmem [resolvable:$false] %s6328_s16 }
  0x85   : > { %s6330_s15 = scalar_lea.vmem %s6329_s16, 13824  ;;  %p6331_p0 = scmp.lt.s32.totalorder %s6668_s12, %s6329_s16 }
  0x86   : > { %p6326_p7 = pnand %p6324_p3, %p6310_p12  ;;  %p6332_p4 = scmp.lt.s32.totalorder %s6330_s15, %s6323_s25 }
  0x88   : > { %p6327_p9 = pneg %p6326_p7  ;;  %p6333_p13 = por %p6332_p4, %p6331_p0 }
  0x8a   : > { %p6334_p6 = pnand %p6333_p13, %p6327_p9 }
  0x8c   : > { %6337 = shalt.err (!%p6334_p6)
}
  0x8d   : > { %6125 = dma.hbm_to_vmem [thread:$0]  (!%p6655_p11), %s6666_s29, 6912, %s6668_s12, %s6670_s14, %s6433_s11, %s6433_s11, %s6434_s13  }
  0x8e   : > { %p7898_p12 = scmp.ne.s32.totalorder %s7892_s30, 0 }
  0x90   : > { %262 = sbr.rel (%p7898_p12) target bundleno = 939 (0x3ab), region = 40 }
  0x97   : > { %s6704_s17 = sand.u32 1, %s6412_s19   ;;  %p7899_p1 = scmp.ne.s32.totalorder %s7889_s28, 0 }
  0x98   : > { %s6088_s7 = smul.u32 432, %s6704_s17  ;;  %s265_s10 = scalar_lea.sflag [#allocation3], %s6704_s17 }
  0x9a   : > { %s6708_s27 = scalar_lea.vmem [#allocation2], %s6088_s7 }
  0x9b   : > { %6391 = dma.done.wait (%p7899_p1), %s265_s10, 6912  }
  0x9c   : > { %6393 = vsyncadd (%p7899_p1), %s265_s10, 4294960384  ;;  %p7900_p11 = scmp.ne.s32.totalorder %s7887_s26, 0 }
  0x9e   : > { %6395 = dma.done.wait (%p7900_p11), [#allocation6], 4624  }
  0x9f   : > { %6397 = vsyncadd (%p7900_p11), [#allocation6], 4294962672 }
  0xa0   : > { %6399 = dma.done.wait (%p7900_p11), [#allocation9], 2064  }
  0xa1   : > { %6401 = vsyncadd (%p7900_p11), [#allocation9], 4294965232  ;;  %v384_v0 = vld [vmem:[#allocation5 + $0x20] sm:$0xff]  ;;  %v385_v1 = vld [vmem:[#allocation5 + $0x28] sm:$0xff]  ;;  %vm388_vm0 = vcmask 261120   ;;  %s4281_s26 = sshll.u32 %s6704_s17, 8 }
  0xa2   : > { %v1847_v2 = vld [vmem:[#allocation5 + $0x80] sm:$0xff]  ;;  %v5726_v3 = vpack.c.bf16 %v385_v1, %v384_v0  ;;  %v1848_v4 = vld [vmem:[#allocation5 + $0x88] sm:$0xff]  ;;  %v386_v5 = vld [vmem:[#allocation5 + $0x30] sm:$0xff]  ;;  %s7706_s28 = scalar_lea.vmem [#allocation11], %s4281_s26  ;;  %s4769_s30 = sshll.u32 %s6420_s21, 12 }
  0xa3   : > { %v387_v6 = vld [vmem:[#allocation5 + $0x38] sm:$0xff]  ;;  %v5758_v7 = vpack.c.bf16 %v1848_v4, %v1847_v2  ;;  %v1849_v9 = vld [vmem:[#allocation5 + $0x90] sm:$0xff]  ;;  %v2237_v14 = vld [vmem:[#allocation5 + $0xa0] sm:$0xff]  ;;  %s4135_s11 = sshll.u32 %s7706_s28, 4  ;;  %s7772_s12 = scalar_lea.hbm %s7831_s5, %s4769_s30  ;;  %s7774_s11 = int_to_ptr.vmem [resolvable:$true] %s4135_s11 }
  0xa4   : > { %v5730_v8 = vpack.c.bf16 %v387_v6, %v386_v5  ;;  %v1850_v10 = vld [vmem:[#allocation5 + $0x98] sm:$0xff]  ;;  %5727 = vmatprep.subr.bf16.mxu1 %v5726_v3  ;;  %v2238_v15 = vld [vmem:[#allocation5 + $0xa8] sm:$0xff]  ;;  %v2239_v20 = vld [vmem:[#allocation5 + $0xb0] sm:$0xff]  ;;  %s4119_s21 = scalar_lea.sflag [#allocation4], %s6704_s17  ;;  %s6338_s29 = scalar_lea.vmem %s7774_s11, 4096 }
  0xa5   : > { %v351_v11 = vld [vmem:[%s6708_s27 + $0x1] sm:$0xff]  ;;  %v5762_v12 = vpack.c.bf16 %v1850_v10, %v1849_v9  ;;  %v4442_v13 = vld [vmem:[%s6708_s27 + $0x19] sm:$0xff]  ;;  %5759 = vmatprep.subr.bf16.mxu0 %v5758_v7  ;;  %5729 = vmatpush3.bf16.msra.mxu1 %v5726_v3  ;;  %v5766_v16 = vpack.c.bf16 %v2238_v15, %v2237_v14  ;;  %v352_v17 = vld [vmem:[%s6708_s27 + $0x9] sm:$0xff]  ;;  %p6339_p2 = scmp.ne.s32.totalorder %s7774_s11, %s6338_s29  ;;  %s6437_s14 = smov [#allocation11]  }
  0xa6   : > { %5150 = vmatprep.mubr.msk.f32.mxu1 %vm388_vm0, %v351_v11  ;;  %5761 = vmatpush3.bf16.msra.mxu0 %v5758_v7  ;;  %v4443_v18 = vld [vmem:[%s6708_s27 + $0x21] sm:$0xff]  ;;  %v6729_v19 = vld [vmem:[%s6708_s27 + $0x31] sm:$0xff]  ;;  %v6737_v23 = vld [vmem:[%s6708_s27 + $0x39] sm:$0xff]  ;;  %s6342_s25 = sshll.u32 %s6437_s14, 4  ;;  %s6343_s25 = int_to_ptr.vmem [resolvable:$false] %s6342_s25 }
  0xa7   : > { %5731 = vmatprep.subr.bf16.mxu1 %v5730_v8  ;;  %5763 = vmatprep.subr.bf16.mxu0 %v5762_v12  ;;  %7901 = vst [vmem:[#allocation18_spill] sm:$0xff] %v6729_v19  ;;  %v2240_v21 = vld [vmem:[#allocation5 + $0xb8] sm:$0xff]  ;;  %7902 = vst [vmem:[#allocation19_spill] sm:$0xff] %v6737_v23  ;;  %v347_v25 = vld [vmem:[#allocation5] sm:$0xff]  ;;  %p6340_p8 = pnand %p6339_p2, %p6648_p5  ;;  %s6344_s18 = scalar_lea.vmem %s6343_s25, 8192 }
  0xa8   : > { %5374 = vmatprep.mubr.msk.f32.mxu0 %vm388_vm0, %v4442_v13  ;;  %v5770_v22 = vpack.c.bf16 %v2240_v21, %v2239_v20  ;;  %v6740_v24 = vld [vmem:[%s6708_s27 + $0x49] sm:$0xff]  ;;  %v6750_v30 = vld [vmem:[%s6708_s27 + $0x51] sm:$0xff]  ;;  %v6753_v31 = vld [vmem:[%s6708_s27 + $0x61] sm:$0xff]  ;;  %p6345_p3 = scmp.lt.s32.totalorder %s7774_s11, %s6343_s25  ;;  %p6346_p7 = scmp.lt.s32.totalorder %s6344_s18, %s6338_s29 }
  0xa9   : > { %5733 = vmatpush3.bf16.msra.mxu1 %v5730_v8  ;;  %7903 = vst [vmem:[#allocation20_spill] sm:$0xff] %v6740_v24  ;;  %v348_v26 = vld [vmem:[#allocation5 + $0x8] sm:$0xff]  ;;  %v349_v28 = vld [vmem:[#allocation5 + $0x10] sm:$0xff]  ;;  %v350_v29 = vld [vmem:[#allocation5 + $0x18] sm:$0xff]  ;;  %p6341_p10 = pneg %p6340_p8 }
  0xaa   : > { %5765 = vmatpush3.bf16.msra.mxu0 %v5762_v12  ;;  %v5734_v27 = vpack.c.bf16 %v348_v26, %v347_v25  ;;  %7904 = vst [vmem:[#allocation21_spill] sm:$0xff] %v6750_v30  ;;  %7905 = vst [vmem:[#allocation22_spill] sm:$0xff] %v6753_v31  ;;  %v5738_v32 = vpack.c.bf16 %v350_v29, %v349_v28  ;;  %v2630_v33 = vld [vmem:[#allocation5 + $0xc0] sm:$0xff]  ;;  %v2631_v34 = vld [vmem:[#allocation5 + $0xc8] sm:$0xff]  ;;  %p6347_p9 = por %p6346_p7, %p6345_p3 }
  0xab   : > { %5767 = vmatprep.subr.bf16.mxu0 %v5766_v16  ;;  %v6757_v35 = vpack.c.bf16 %v2631_v34, %v2630_v33  ;;  %v6766_v36 = vld [vmem:[%s6708_s27 + $0x69] sm:$0xff]  ;;  %v6769_v37 = vld [vmem:[%s6708_s27 + $0x79] sm:$0xff]  ;;  %v6781_v38 = vld [vmem:[%s6708_s27 + $0x81] sm:$0xff] }
  0xac   : > { %5151 = vmatmul.mubr.msk.f32.vlgmr.msra.gmra.mrb[0].mxu1 %vm388_vm0, %v352_v17  ;;  %5735 = vmatprep.subr.bf16.mxu1 %v5734_v27  ;;  %7906 = vst [vmem:[#allocation23_spill] sm:$0xff] %v6766_v36  ;;  %7907 = vst [vmem:[#allocation24_spill] sm:$0xff] %v6769_v37  ;;  %v6784_v39 = vld [vmem:[%s6708_s27 + $0x91] sm:$0xff]  ;;  %v6795_v40 = vld [vmem:[%s6708_s27 + $0x99] sm:$0xff]  ;;  %p6348_p0 = pnand %p6347_p9, %p6341_p10 }
  0xad   : > { %5375 = vmatmul.mubr.msk.f32.vlgmr.msra.gmra.mrb[0].mxu0 %vm388_vm0, %v4443_v18  ;;  %5153 = vmatprep.mubr.msk.f32.mxu1 %vm388_vm0, %v4442_v13  ;;  %7908 = vst [vmem:[#allocation25_spill] sm:$0xff] %v6781_v38  ;;  %7909 = vst [vmem:[#allocation26_spill] sm:$0xff] %v6784_v39  ;;  %v6798_v41 = vld [vmem:[%s6708_s27 + $0xa9] sm:$0xff]  ;;  %v6809_v42 = vld [vmem:[%s6708_s27 + $0xb1] sm:$0xff] }
  0xae   : > { %5769 = vmatpush3.bf16.msra.mxu0 %v5766_v16  ;;  %5377 = vmatprep.mubr.msk.f32.mxu0 %vm388_vm0, %v6729_v19  ;;  %7910 = vst [vmem:[#allocation27_spill] sm:$0xff] %v6795_v40  ;;  %7911 = vst [vmem:[#allocation28_spill] sm:$0xff] %v6798_v41  ;;  %v6812_v43 = vld [vmem:[%s6708_s27 + $0xc1] sm:$0xff]  ;;  %v6823_v44 = vld [vmem:[%s6708_s27 + $0xc9] sm:$0xff] }
  0xaf   : > { %5771 = vmatprep.subr.bf16.mxu0 %v5770_v22  ;;  %5737 = vmatpush3.bf16.msra.mxu1 %v5734_v27  ;;  %7912 = vst [vmem:[#allocation29_spill] sm:$0xff] %v6809_v42  ;;  %7913 = vst [vmem:[#allocation30_spill] sm:$0xff] %v6812_v43  ;;  %v1064_v45 = vld [vmem:[#allocation5 + $0x40] sm:$0xff]  ;;  %v1065_v47 = vld [vmem:[#allocation5 + $0x48] sm:$0xff] }
  0xb0   : > { %5154 = vmatmul.mubr.msk.f32.gmra.mrb[2].mxu1 %vm388_vm0, %v4443_v18  ;;  %5739 = vmatprep.subr.bf16.mxu1 %v5738_v32  ;;  %7914 = vst [vmem:[#allocation31_spill] sm:$0xff] %v6823_v44  ;;  %v6826_v46 = vld [vmem:[%s6708_s27 + $0xd9] sm:$0xff]  ;;  %v6830_v48 = vpack.c.bf16 %v1065_v47, %v1064_v45  ;;  %v6839_v49 = vld [vmem:[%s6708_s27 + $0xe1] sm:$0xff]  ;;  %v6843_v50 = vld [vmem:[%s6708_s27 + $0xf1] sm:$0xff] }
  0xb1   : > { %5378 = vmatmul.mubr.msk.f32.gmra.mrb[2].mxu0 %vm388_vm0, %v6737_v23  ;;  %5156 = vmatprep.mubr.msk.f32.mxu1 %vm388_vm0, %v6729_v19  ;;  %7915 = vst [vmem:[#allocation32_spill] sm:$0xff] %v6826_v46  ;;  %7916 = vst [vmem:[#allocation33_spill] sm:$0xff] %v6839_v49  ;;  %v6854_v51 = vld [vmem:[%s6708_s27 + $0xf9] sm:$0xff]  ;;  %v6857_v52 = vld [vmem:[%s6708_s27 + $0x109] sm:$0xff] }
  0xb2   : > { %5380 = vmatprep.mubr.msk.f32.mxu0 %vm388_vm0, %v6740_v24  ;;  %5773 = vmatpush3.bf16.msra.mxu0 %v5770_v22  ;;  %7917 = vst [vmem:[#allocation34_spill] sm:$0xff] %v6843_v50  ;;  %7918 = vst [vmem:[#allocation35_spill] sm:$0xff] %v6854_v51  ;;  %v6868_v53 = vld [vmem:[%s6708_s27 + $0x111] sm:$0xff]  ;;  %v6871_v54 = vld [vmem:[%s6708_s27 + $0x121] sm:$0xff] }
  0xb3   : > { %5775 = vmatprep.subr.bf16.mxu0 %v6757_v35  ;;  %5741 = vmatpush3.bf16.msra.mxu1 %v5738_v32  ;;  %7919 = vst [vmem:[#allocation36_spill] sm:$0xff] %v6857_v52  ;;  %7920 = vst [vmem:[#allocation37_spill] sm:$0xff] %v6868_v53  ;;  %v6882_v55 = vld [vmem:[%s6708_s27 + $0x129] sm:$0xff]  ;;  %v6885_v56 = vld [vmem:[%s6708_s27 + $0x139] sm:$0xff] }
  0xb4   : > { %5157 = vmatmul.mubr.msk.f32.gmra.mrb[4].mxu1 %vm388_vm0, %v6737_v23  ;;  %5743 = vmatprep.subr.bf16.mxu1 %v6830_v48  ;;  %7921 = vst [vmem:[#allocation38_spill] sm:$0xff] %v6871_v54  ;;  %7922 = vst [vmem:[#allocation39_spill] sm:$0xff] %v6882_v55  ;;  %v6896_v57 = vld [vmem:[%s6708_s27 + $0x141] sm:$0xff]  ;;  %v6899_v58 = vld [vmem:[%s6708_s27 + $0x151] sm:$0xff] }
  0xb5   : > { %5381 = vmatmul.mubr.msk.f32.gmra.mrb[4].mxu0 %vm388_vm0, %v6750_v30  ;;  %5159 = vmatprep.mubr.msk.f32.mxu1 %vm388_vm0, %v6740_v24  ;;  %7923 = vst [vmem:[#allocation40_spill] sm:$0xff] %v6885_v56  ;;  %7924 = vst [vmem:[#allocation41_spill] sm:$0xff] %v6896_v57  ;;  %v6910_v59 = vld [vmem:[%s6708_s27 + $0x159] sm:$0xff]  ;;  %v6913_v60 = vld [vmem:[%s6708_s27 + $0x169] sm:$0xff] }
  0xb6   : > { %5383 = vmatprep.mubr.msk.f32.mxu0 %vm388_vm0, %v6753_v31  ;;  %7925 = vst [vmem:[#allocation42_spill] sm:$0xff] %v6899_v58  ;;  %7926 = vst [vmem:[#allocation43_spill] sm:$0xff] %v6910_v59  ;;  %v6924_v61 = vld [vmem:[%s6708_s27 + $0x171] sm:$0xff]  ;;  %v6927_v62 = vld [vmem:[%s6708_s27 + $0x181] sm:$0xff] }
  0xb7   : > { %7927 = vst [vmem:[#allocation44_spill] sm:$0xff] %v6913_v60  ;;  %7928 = vst [vmem:[#allocation45_spill] sm:$0xff] %v6924_v61  ;;  %v6938_v63 = vld [vmem:[%s6708_s27 + $0x189] sm:$0xff]  ;;  %v315_v0 = vld [vmem:[%s6708_s27] sm:$0xff] }
  0xb8   : > { %5160 = vmatmul.mubr.msk.f32.gmra.mrb[6].mxu1 %vm388_vm0, %v6750_v30  ;;  %7929 = vst [vmem:[#allocation46_spill] sm:$0xff] %v6927_v62  ;;  %7930 = vst [vmem:[#allocation47_spill] sm:$0xff] %v6938_v63  ;;  %v6942_v1 = vld [vmem:[%s6708_s27 + $0x1a] sm:$0xff]  ;;  %v316_v4 = vld [vmem:[%s6708_s27 + $0x8] sm:$0xff] }
  0xb9   : > { %5384 = vmatmul.mubr.msk.f32.gmra.mrb[6].mxu0 %vm388_vm0, %v6766_v36  ;;  %5162 = vmatprep.mubr.msk.f32.mxu1 %vm388_vm0, %v6753_v31  ;;  %v2632_v2 = vld [vmem:[#allocation5 + $0xd0] sm:$0xff]  ;;  %v2633_v3 = vld [vmem:[#allocation5 + $0xd8] sm:$0xff]  ;;  %v3020_v12 = vld [vmem:[#allocation5 + $0xe0] sm:$0xff] }
  0xba   : > { %5386 = vmatprep.mubr.msk.f32.mxu0 %vm388_vm0, %v6769_v37  ;;  %v1066_v5 = vld [vmem:[#allocation5 + $0x50] sm:$0xff]  ;;  %v1067_v6 = vld [vmem:[#allocation5 + $0x58] sm:$0xff]  ;;  %v5778_v10 = vpack.c.bf16 %v2633_v3, %v2632_v2  ;;  %v3021_v13 = vld [vmem:[#allocation5 + $0xe8] sm:$0xff] }
  0xbb   : > { %v6953_v7 = vld [vmem:[%s6708_s27 + $0x22] sm:$0xff]  ;;  %v6956_v8 = vld [vmem:[%s6708_s27 + $0x18] sm:$0xff]  ;;  %v5746_v11 = vpack.c.bf16 %v1067_v6, %v1066_v5  ;;  %v6976_v18 = vld [vmem:[%s6708_s27 + $0x30] sm:$0xff]  ;;  %v6982_v21 = vpack.c.bf16 %v3021_v13, %v3020_v12 }
  0xbc   : > { %5163 = vmatmul.mubr.msk.f32.gmra.mrb[8].mxu1 %vm388_vm0, %v6766_v36  ;;  %7931 = vst [vmem:[#allocation48_spill] sm:$0xff] %v6956_v8  ;;  %v6959_v9 = vld [vmem:[%s6708_s27 + $0x32] sm:$0xff]  ;;  %v6967_v14 = vld [vmem:[%s6708_s27 + $0x20] sm:$0xff]  ;;  %v6979_v20 = vld [vmem:[%s6708_s27 + $0x4a] sm:$0xff] }
  0xbd   : > { %5387 = vmatmul.mubr.msk.f32.gmra.mrb[8].mxu0 %vm388_vm0, %v6781_v38  ;;  %5165 = vmatprep.mubr.msk.f32.mxu1 %vm388_vm0, %v6769_v37  ;;  %7932 = vst [vmem:[#allocation49_spill] sm:$0xff] %v6967_v14  ;;  %v1457_v15 = vld [vmem:[#allocation5 + $0x60] sm:$0xff]  ;;  %v1458_v16 = vld [vmem:[#allocation5 + $0x68] sm:$0xff] }
  0xbe   : > { %5389 = vmatprep.mubr.msk.f32.mxu0 %vm388_vm0, %v6784_v39  ;;  %v6973_v17 = vld [vmem:[%s6708_s27 + $0x3a] sm:$0xff]  ;;  %v6986_v22 = vpack.c.bf16 %v1458_v16, %v1457_v15  ;;  %v6998_v26 = vld [vmem:[%s6708_s27 + $0x52] sm:$0xff]  ;;  %v7001_v27 = vld [vmem:[%s6708_s27 + $0x48] sm:$0xff] }
  0xbf   : > { %v6993_v25 = vld [vmem:[%s6708_s27 + $0x38] sm:$0xff]  ;;  %v7004_v28 = vld [vmem:[%s6708_s27 + $0x62] sm:$0xff]  ;;  %v7015_v29 = vld [vmem:[%s6708_s27 + $0x50] sm:$0xff] }
  0xc0   : > { %5166 = vmatmul.mubr.msk.f32.gmra.mrb[10].mxu1 %vm388_vm0, %v6781_v38  ;;  %v7020_v32 = vld [vmem:[%s6708_s27 + $0x6a] sm:$0xff]  ;;  %v7023_v33 = vld [vmem:[%s6708_s27 + $0x60] sm:$0xff]  ;;  %v7043_v47 = vld [vmem:[%s6708_s27 + $0x78] sm:$0xff] }
  0xc1   : > { %5390 = vmatmul.mubr.msk.f32.gmra.mrb[10].mxu0 %vm388_vm0, %v6795_v40  ;;  %5168 = vmatprep.mubr.msk.f32.mxu1 %vm388_vm0, %v6784_v39  ;;  %v7026_v34 = vld [vmem:[%s6708_s27 + $0x7a] sm:$0xff]  ;;  %v7040_v45 = vld [vmem:[%s6708_s27 + $0x82] sm:$0xff]  ;;  %v7063_v3 = vld [vmem:[%s6708_s27 + $0x90] sm:$0xff] }
  0xc2   : > { %5392 = vmatprep.mubr.msk.f32.mxu0 %vm388_vm0, %v6798_v41  ;;  %v7060_v2 = vld [vmem:[%s6708_s27 + $0x9a] sm:$0xff]  ;;  %v7080_v6 = vld [vmem:[%s6708_s27 + $0xb2] sm:$0xff]  ;;  %v7100_v13 = vld [vmem:[%s6708_s27 + $0xca] sm:$0xff] }
  0xc3   : > { %v7075_v5 = vld [vmem:[%s6708_s27 + $0x98] sm:$0xff]  ;;  %v7095_v12 = vld [vmem:[%s6708_s27 + $0xb0] sm:$0xff]  ;;  %v7103_v15 = vld [vmem:[%s6708_s27 + $0xc0] sm:$0xff] }
  0xc4   : > { %5169 = vmatmul.mubr.msk.f32.gmra.mrb[12].mxu1 %vm388_vm0, %v6795_v40  ;;  %v7106_v16 = vld [vmem:[%s6708_s27 + $0xda] sm:$0xff]  ;;  %v7223_v38 = vld [vmem:[%s6708_s27 + $0x150] sm:$0xff]  ;;  %v7243_v30 = vld [vmem:[%s6708_s27 + $0x168] sm:$0xff] }
  0xc5   : > { %5393 = vmatmul.mubr.msk.f32.gmra.mrb[12].mxu0 %vm388_vm0, %v6809_v42  ;;  %5171 = vmatprep.mubr.msk.f32.mxu1 %vm388_vm0, %v6798_v41  ;;  %v7206_v41 = vld [vmem:[%s6708_s27 + $0x152] sm:$0xff]  ;;  %v7215_v40 = vld [vmem:[%s6708_s27 + $0x140] sm:$0xff]  ;;  %v7226_v37 = vld [vmem:[%s6708_s27 + $0x16a] sm:$0xff]  ;;  %7939 = vst [vmem:[#allocation56_spill] sm:$0xff] %v7243_v30 }
  0xc6   : > { %5395 = vmatprep.mubr.msk.f32.mxu0 %vm388_vm0, %v6812_v43  ;;  %7935 = vst [vmem:[#allocation52_spill] sm:$0xff] %v7206_v41  ;;  %v7220_v39 = vld [vmem:[%s6708_s27 + $0x15a] sm:$0xff]  ;;  %7937 = vst [vmem:[#allocation54_spill] sm:$0xff] %v7226_v37  ;;  %v7240_v31 = vld [vmem:[%s6708_s27 + $0x172] sm:$0xff] }
  0xc7   : > { %7936 = vst [vmem:[#allocation53_spill] sm:$0xff] %v7220_v39  ;;  %v7235_v36 = vld [vmem:[%s6708_s27 + $0x158] sm:$0xff]  ;;  %7938 = vst [vmem:[#allocation55_spill] sm:$0xff] %v7240_v31  ;;  %v7246_v24 = vld [vmem:[%s6708_s27 + $0x182] sm:$0xff] }
  0xc8   : > { %5172 = vmatmul.mubr.msk.f32.gmra.mrb[14].mxu1 %vm388_vm0, %v6809_v42  ;;  %v7203_v42 = vld [vmem:[%s6708_s27 + $0x138] sm:$0xff]  ;;  %7940 = vst [vmem:[#allocation57_spill] sm:$0xff] %v7246_v24  ;;  %v7255_v23 = vld [vmem:[%s6708_s27 + $0x170] sm:$0xff]  ;;  %v1031_v19 = vld [vmem:[%s6708_s27 + $0x2] sm:$0xff] }
  0xc9   : > { %5396 = vmatmul.mubr.msk.f32.gmra.mrb[14].mxu0 %vm388_vm0, %v6823_v44  ;;  %5174 = vmatprep.mubr.msk.f32.mxu1 %vm388_vm0, %v6812_v43  ;;  %v7200_v43 = vld [vmem:[%s6708_s27 + $0x142] sm:$0xff] }
  0xca   : > { %5398 = vmatprep.mubr.msk.f32.mxu0 %vm388_vm0, %v6826_v46  ;;  %7934 = vst [vmem:[#allocation51_spill] sm:$0xff] %v7200_v43 }
  0xcc   : > { %5175 = vmatmul.mubr.msk.f32.gmra.mrb[16].mxu1 %vm388_vm0, %v6823_v44  ;;  %v7195_v44 = vld [vmem:[%s6708_s27 + $0x128] sm:$0xff] }
  0xcd   : > { %5399 = vmatmul.mubr.msk.f32.gmra.mrb[16].mxu0 %vm388_vm0, %v6839_v49  ;;  %5177 = vmatprep.mubr.msk.f32.mxu1 %vm388_vm0, %v6826_v46  ;;  %v7186_v46 = vld [vmem:[%s6708_s27 + $0x13a] sm:$0xff] }
  0xce   : > { %5401 = vmatprep.mubr.msk.f32.mxu0 %vm388_vm0, %v6843_v50  ;;  %7933 = vst [vmem:[#allocation50_spill] sm:$0xff] %v7186_v46 }
  0xd0   : > { %5178 = vmatmul.mubr.msk.f32.gmra.mrb[18].mxu1 %vm388_vm0, %v6839_v49  ;;  %v7183_v49 = vld [vmem:[%s6708_s27 + $0x120] sm:$0xff] }
  0xd1   : > { %5402 = vmatmul.mubr.msk.f32.gmra.mrb[18].mxu0 %vm388_vm0, %v6854_v51  ;;  %5180 = vmatprep.mubr.msk.f32.mxu1 %vm388_vm0, %v6843_v50  ;;  %v7180_v50 = vld [vmem:[%s6708_s27 + $0x12a] sm:$0xff] }
  0xd2   : > { %5404 = vmatprep.mubr.msk.f32.mxu0 %vm388_vm0, %v6857_v52 }
  0xd4   : > { %5181 = vmatmul.mubr.msk.f32.gmra.mrb[20].mxu1 %vm388_vm0, %v6854_v51  ;;  %v7175_v51 = vld [vmem:[%s6708_s27 + $0x110] sm:$0xff] }
  0xd5   : > { %5405 = vmatmul.mubr.msk.f32.gmra.mrb[20].mxu0 %vm388_vm0, %v6868_v53  ;;  %5183 = vmatprep.mubr.msk.f32.mxu1 %vm388_vm0, %v6857_v52  ;;  %v7166_v52 = vld [vmem:[%s6708_s27 + $0x122] sm:$0xff] }
  0xd6   : > { %5407 = vmatprep.mubr.msk.f32.mxu0 %vm388_vm0, %v6871_v54 }
  0xd8   : > { %5184 = vmatmul.mubr.msk.f32.gmra.mrb[22].mxu1 %vm388_vm0, %v6868_v53  ;;  %v7163_v53 = vld [vmem:[%s6708_s27 + $0x108] sm:$0xff] }
  0xd9   : > { %5408 = vmatmul.mubr.msk.f32.gmra.mrb[22].mxu0 %vm388_vm0, %v6882_v55  ;;  %5186 = vmatprep.mubr.msk.f32.mxu1 %vm388_vm0, %v6871_v54  ;;  %v7160_v54 = vld [vmem:[%s6708_s27 + $0x112] sm:$0xff] }
  0xda   : > { %5410 = vmatprep.mubr.msk.f32.mxu0 %vm388_vm0, %v6885_v56 }
  0xdc   : > { %5187 = vmatmul.mubr.msk.f32.gmra.mrb[24].mxu1 %vm388_vm0, %v6882_v55  ;;  %v7155_v55 = vld [vmem:[%s6708_s27 + $0xf8] sm:$0xff] }
  0xdd   : > { %5411 = vmatmul.mubr.msk.f32.gmra.mrb[24].mxu0 %vm388_vm0, %v6896_v57  ;;  %5189 = vmatprep.mubr.msk.f32.mxu1 %vm388_vm0, %v6885_v56  ;;  %v7146_v56 = vld [vmem:[%s6708_s27 + $0x10a] sm:$0xff] }
  0xde   : > { %5413 = vmatprep.mubr.msk.f32.mxu0 %vm388_vm0, %v6899_v58 }
  0xe0   : > { %5190 = vmatmul.mubr.msk.f32.gmra.mrb[26].mxu1 %vm388_vm0, %v6896_v57  ;;  %v7143_v57 = vld [vmem:[%s6708_s27 + $0xf0] sm:$0xff] }
  0xe1   : > { %5414 = vmatmul.mubr.msk.f32.gmra.mrb[26].mxu0 %vm388_vm0, %v6910_v59  ;;  %5192 = vmatprep.mubr.msk.f32.mxu1 %vm388_vm0, %v6899_v58  ;;  %v7140_v58 = vld [vmem:[%s6708_s27 + $0xfa] sm:$0xff] }
  0xe2   : > { %5416 = vmatprep.mubr.msk.f32.mxu0 %vm388_vm0, %v6913_v60 }
  0xe4   : > { %5193 = vmatmul.mubr.msk.f32.gmra.mrb[28].mxu1 %vm388_vm0, %v6910_v59  ;;  %v7135_v59 = vld [vmem:[%s6708_s27 + $0xe0] sm:$0xff] }
  0xe5   : > { %5417 = vmatmul.mubr.msk.f32.gmra.mrb[28].mxu0 %vm388_vm0, %v6924_v61  ;;  %5195 = vmatprep.mubr.msk.f32.mxu1 %vm388_vm0, %v6913_v60  ;;  %v7126_v60 = vld [vmem:[%s6708_s27 + $0xf2] sm:$0xff] }
  0xe6   : > { %5419 = vmatprep.mubr.msk.f32.mxu0 %vm388_vm0, %v6927_v62  ;;  %v7120_v62 = vld [vmem:[%s6708_s27 + $0xe2] sm:$0xff] }
  0xe8   : > { %5196 = vmatmul.mubr.msk.f32.gmra.mrb[30].mxu1 %vm388_vm0, %v6924_v61  ;;  %v7123_v61 = vld [vmem:[%s6708_s27 + $0xd8] sm:$0xff] }
  0xe9   : > { %5420 = vmatmul.mubr.msk.f32.gmra.mrb[30].mxu0 %vm388_vm0, %v6938_v63  ;;  %5206 = vmatprep.mubr.msk.f32.mxu1 %vm388_vm0, %v315_v0  ;;  %v7055_v0 = vld [vmem:[%s6708_s27 + $0x80] sm:$0xff]  ;;  %v7115_v63 = vld [vmem:[%s6708_s27 + $0xc8] sm:$0xff] }
  0xea   : > { %5430 = vmatprep.mubr.msk.f32.mxu0 %vm388_vm0, %v6942_v1 }
  0xec   : > { %5207 = vmatmul.mubr.msk.f32.vlgmr.msra.gmra.mrb[0].mxu1 %vm388_vm0, %v316_v4  ;;  %v7066_v4 = vld [vmem:[%s6708_s27 + $0xaa] sm:$0xff] }
  0xed   : > { %5431 = vmatmul.mubr.msk.f32.vlgmr.msra.gmra.mrb[0].mxu0 %vm388_vm0, %v6953_v7  ;;  %5209 = vmatprep.mubr.msk.f32.mxu1 %vm388_vm0, %v6956_v8  ;;  %v3022_v8 = vld [vmem:[#allocation5 + $0xf0] sm:$0xff] }
  0xee   : > { %5777 = vmatpush3.bf16.msra.mxu0 %v6757_v35  ;;  %5433 = vmatprep.mubr.msk.f32.mxu0 %vm388_vm0, %v6959_v9  ;;  %v7035_v35 = vld [vmem:[%s6708_s27 + $0x68] sm:$0xff] }
  0xef   : > { %5779 = vmatprep.subr.bf16.mxu0 %v5778_v10  ;;  %5745 = vmatpush3.bf16.msra.mxu1 %v6830_v48  ;;  %v7046_v48 = vld [vmem:[%s6708_s27 + $0x92] sm:$0xff] }
  0xf0   : > { %5210 = vmatmul.mubr.msk.f32.gmra.mrb[2].mxu1 %vm388_vm0, %v6967_v14  ;;  %5747 = vmatprep.subr.bf16.mxu1 %v5746_v11  ;;  %v7260_v14 = vld [vmem:[%s6708_s27 + $0x18a] sm:$0xff] }
  0xf1   : > { %5434 = vmatmul.mubr.msk.f32.gmra.mrb[2].mxu0 %vm388_vm0, %v6973_v17  ;;  %5212 = vmatprep.mubr.msk.f32.mxu1 %vm388_vm0, %v6976_v18  ;;  %7941 = vst [vmem:[#allocation58_spill] sm:$0xff] %v7260_v14 }
  0xf2   : > { %5436 = vmatprep.mubr.msk.f32.mxu0 %vm388_vm0, %v6979_v20  ;;  %5781 = vmatpush3.bf16.msra.mxu0 %v5778_v10  ;;  %v7083_v10 = vld [vmem:[%s6708_s27 + $0xa8] sm:$0xff] }
  0xf3   : > { %5749 = vmatpush3.bf16.msra.mxu1 %v5746_v11  ;;  %5783 = vmatprep.subr.bf16.mxu0 %v6982_v21  ;;  %v7086_v11 = vld [vmem:[%s6708_s27 + $0xc2] sm:$0xff] }
  0xf4   : > { %5213 = vmatmul.mubr.msk.f32.gmra.mrb[4].mxu1 %vm388_vm0, %v6993_v25  ;;  %5751 = vmatprep.subr.bf16.mxu1 %v6986_v22 }
  0xf5   : > { %5437 = vmatmul.mubr.msk.f32.gmra.mrb[4].mxu0 %vm388_vm0, %v6998_v26  ;;  %5215 = vmatprep.mubr.msk.f32.mxu1 %vm388_vm0, %v7001_v27 }
  0xf6   : > { %5439 = vmatprep.mubr.msk.f32.mxu0 %vm388_vm0, %v7004_v28 }
  0xf8   : > { %5216 = vmatmul.mubr.msk.f32.gmra.mrb[6].mxu1 %vm388_vm0, %v7015_v29 }
  0xf9   : > { %5440 = vmatmul.mubr.msk.f32.gmra.mrb[6].mxu0 %vm388_vm0, %v7020_v32  ;;  %5218 = vmatprep.mubr.msk.f32.mxu1 %vm388_vm0, %v7023_v33 }
  0xfa   : > { %5442 = vmatprep.mubr.msk.f32.mxu0 %vm388_vm0, %v7026_v34 }
  0xfc   : > { %5219 = vmatmul.mubr.msk.f32.gmra.mrb[8].mxu1 %vm388_vm0, %v7035_v35 }
  0xfd   : > { %5443 = vmatmul.mubr.msk.f32.gmra.mrb[8].mxu0 %vm388_vm0, %v7040_v45  ;;  %5221 = vmatprep.mubr.msk.f32.mxu1 %vm388_vm0, %v7043_v47 }
  0xfe   : > { %5445 = vmatprep.mubr.msk.f32.mxu0 %vm388_vm0, %v7046_v48 }
 0x100   : > { %5222 = vmatmul.mubr.msk.f32.gmra.mrb[10].mxu1 %vm388_vm0, %v7055_v0 }
 0x101   : > { %5446 = vmatmul.mubr.msk.f32.gmra.mrb[10].mxu0 %vm388_vm0, %v7060_v2  ;;  %5224 = vmatprep.mubr.msk.f32.mxu1 %vm388_vm0, %v7063_v3 }
 0x102   : > { %5448 = vmatprep.mubr.msk.f32.mxu0 %vm388_vm0, %v7066_v4 }
 0x104   : > { %5225 = vmatmul.mubr.msk.f32.gmra.mrb[12].mxu1 %vm388_vm0, %v7075_v5 }
 0x105   : > { %5449 = vmatmul.mubr.msk.f32.gmra.mrb[12].mxu0 %vm388_vm0, %v7080_v6  ;;  %5227 = vmatprep.mubr.msk.f32.mxu1 %vm388_vm0, %v7083_v10 }
 0x106   : > { %5451 = vmatprep.mubr.msk.f32.mxu0 %vm388_vm0, %v7086_v11 }
 0x108   : > { %5228 = vmatmul.mubr.msk.f32.gmra.mrb[14].mxu1 %vm388_vm0, %v7095_v12 }
 0x109   : > { %5452 = vmatmul.mubr.msk.f32.gmra.mrb[14].mxu0 %vm388_vm0, %v7100_v13  ;;  %5230 = vmatprep.mubr.msk.f32.mxu1 %vm388_vm0, %v7103_v15 }
 0x10a   : > { %5454 = vmatprep.mubr.msk.f32.mxu0 %vm388_vm0, %v7106_v16 }
 0x10c   : > { %5231 = vmatmul.mubr.msk.f32.gmra.mrb[16].mxu1 %vm388_vm0, %v7115_v63 }
 0x10d   : > { %5455 = vmatmul.mubr.msk.f32.gmra.mrb[16].mxu0 %vm388_vm0, %v7120_v62  ;;  %5233 = vmatprep.mubr.msk.f32.mxu1 %vm388_vm0, %v7123_v61 }
 0x10e   : > { %5457 = vmatprep.mubr.msk.f32.mxu0 %vm388_vm0, %v7126_v60 }
 0x110   : > { %5234 = vmatmul.mubr.msk.f32.gmra.mrb[18].mxu1 %vm388_vm0, %v7135_v59 }
 0x111   : > { %5458 = vmatmul.mubr.msk.f32.gmra.mrb[18].mxu0 %vm388_vm0, %v7140_v58  ;;  %5236 = vmatprep.mubr.msk.f32.mxu1 %vm388_vm0, %v7143_v57 }
 0x112   : > { %5460 = vmatprep.mubr.msk.f32.mxu0 %vm388_vm0, %v7146_v56 }
 0x114   : > { %5237 = vmatmul.mubr.msk.f32.gmra.mrb[20].mxu1 %vm388_vm0, %v7155_v55 }
 0x115   : > { %5461 = vmatmul.mubr.msk.f32.gmra.mrb[20].mxu0 %vm388_vm0, %v7160_v54  ;;  %5239 = vmatprep.mubr.msk.f32.mxu1 %vm388_vm0, %v7163_v53 }
 0x116   : > { %5463 = vmatprep.mubr.msk.f32.mxu0 %vm388_vm0, %v7166_v52 }
 0x118   : > { %5240 = vmatmul.mubr.msk.f32.gmra.mrb[22].mxu1 %vm388_vm0, %v7175_v51 }
 0x119   : > { %5464 = vmatmul.mubr.msk.f32.gmra.mrb[22].mxu0 %vm388_vm0, %v7180_v50  ;;  %5242 = vmatprep.mubr.msk.f32.mxu1 %vm388_vm0, %v7183_v49 }
 0x11a   : > { %5466 = vmatprep.mubr.msk.f32.mxu0 %vm388_vm0, %v7186_v46  ;;  %v3411_v46 = vld [vmem:[#allocation5 + $0x108] sm:$0xff] }
 0x11c   : > { %5243 = vmatmul.mubr.msk.f32.gmra.mrb[24].mxu1 %vm388_vm0, %v7195_v44 }
 0x11d   : > { %5467 = vmatmul.mubr.msk.f32.gmra.mrb[24].mxu0 %vm388_vm0, %v7200_v43  ;;  %5245 = vmatprep.mubr.msk.f32.mxu1 %vm388_vm0, %v7203_v42 }
 0x11e   : > { %5469 = vmatprep.mubr.msk.f32.mxu0 %vm388_vm0, %v7206_v41  ;;  %v1460_v41 = vld [vmem:[#allocation5 + $0x78] sm:$0xff] }
 0x120   : > { %5246 = vmatmul.mubr.msk.f32.gmra.mrb[26].mxu1 %vm388_vm0, %v7215_v40 }
 0x121   : > { %5470 = vmatmul.mubr.msk.f32.gmra.mrb[26].mxu0 %vm388_vm0, %v7220_v39  ;;  %5248 = vmatprep.mubr.msk.f32.mxu1 %vm388_vm0, %v7223_v38  ;;  %v1459_v39 = vld [vmem:[#allocation5 + $0x70] sm:$0xff] }
 0x122   : > { %5472 = vmatprep.mubr.msk.f32.mxu0 %vm388_vm0, %v7226_v37  ;;  %v3023_v37 = vld [vmem:[#allocation5 + $0xf8] sm:$0xff]  ;;  %v5754_v43 = vpack.c.bf16 %v1460_v41, %v1459_v39 }
 0x123   : > { %v7945_v39 = vld [vmem:[#allocation52_spill] sm:$0xff] }
 0x124   : > { %5249 = vmatmul.mubr.msk.f32.gmra.mrb[28].mxu1 %vm388_vm0, %v7235_v36  ;;  %v7391_v41 = vld [vmem:[%s6708_s27 + $0x188] sm:$0xff] }
 0x125   : > { %5473 = vmatmul.mubr.msk.f32.gmra.mrb[28].mxu0 %vm388_vm0, %v7240_v31  ;;  %5251 = vmatprep.mubr.msk.f32.mxu1 %vm388_vm0, %v7243_v30  ;;  %v1032_v31 = vld [vmem:[%s6708_s27 + $0xa] sm:$0xff] }
 0x126   : > { %5475 = vmatprep.mubr.msk.f32.mxu0 %vm388_vm0, %v7246_v24  ;;  %v5786_v24 = vpack.c.bf16 %v3023_v37, %v3022_v8  ;;  %v3410_v30 = vld [vmem:[#allocation5 + $0x100] sm:$0xff]  ;;  %v7944_v37 = vld [vmem:[#allocation51_spill] sm:$0xff] }
 0x127   : > { %v7948_v8 = vld [vmem:[#allocation55_spill] sm:$0xff] }
 0x128   : > { %5252 = vmatmul.mubr.msk.f32.gmra.mrb[30].mxu1 %vm388_vm0, %v7255_v23 }
 0x129   : > { %5476 = vmatmul.mubr.msk.f32.gmra.mrb[30].mxu0 %vm388_vm0, %v7260_v14  ;;  %5262 = vmatprep.mubr.msk.f32.mxu1 %vm388_vm0, %v1031_v19  ;;  %v7280_v19 = vpack.c.bf16 %v3411_v46, %v3410_v30  ;;  %v7943_v30 = vld [vmem:[#allocation56_spill] sm:$0xff]  ;;  %v7946_v46 = vld [vmem:[#allocation53_spill] sm:$0xff] }
 0x12a   : > { %5486 = vmatprep.mubr.msk.f32.mxu0 %vm388_vm0, %v6976_v18  ;;  %v7949_v14 = vld [vmem:[#allocation48_spill] sm:$0xff] }
 0x12c   : > { %5263 = vmatmul.mubr.msk.f32.vlgmr.msra.gmra.mrb[0].mxu1 %vm388_vm0, %v1032_v31  ;;  %v7380_v31 = vld [vmem:[%s6708_s27 + $0x180] sm:$0xff] }
 0x12d   : > { %5487 = vmatmul.mubr.msk.f32.vlgmr.msra.gmra.mrb[0].mxu0 %vm388_vm0, %v6993_v25  ;;  %5265 = vmatprep.mubr.msk.f32.mxu1 %vm388_vm0, %v6942_v1  ;;  %v7947_v1 = vld [vmem:[#allocation54_spill] sm:$0xff] }
 0x12e   : > { %5785 = vmatpush3.bf16.msra.mxu0 %v6982_v21  ;;  %5489 = vmatprep.mubr.msk.f32.mxu0 %vm388_vm0, %v7001_v27  ;;  %v3412_v21 = vld [vmem:[#allocation5 + $0x110] sm:$0xff] }
 0x12f   : > { %5787 = vmatprep.subr.bf16.mxu0 %v5786_v24  ;;  %5753 = vmatpush3.bf16.msra.mxu1 %v6986_v22  ;;  %v3413_v22 = vld [vmem:[#allocation5 + $0x118] sm:$0xff] }
 0x130   : > { %5266 = vmatmul.mubr.msk.f32.gmra.mrb[2].mxu1 %vm388_vm0, %v6953_v7  ;;  %5755 = vmatprep.subr.bf16.mxu1 %v5754_v43  ;;  %v4601_v7 = vld [vmem:[%s6708_s27 + $0x1a0] sm:$0xff] }
 0x131   : > { %5490 = vmatmul.mubr.msk.f32.gmra.mrb[2].mxu0 %vm388_vm0, %v7015_v29  ;;  %5268 = vmatprep.mubr.msk.f32.mxu1 %vm388_vm0, %v6959_v9 }
 0x132   : > { %5492 = vmatprep.mubr.msk.f32.mxu0 %vm388_vm0, %v7023_v33  ;;  %5789 = vmatpush3.bf16.msra.mxu0 %v5786_v24  ;;  %v7942_v24 = vld [vmem:[#allocation50_spill] sm:$0xff] }
 0x133   : > { %5757 = vmatpush3.bf16.msra.mxu1 %v5754_v43  ;;  %5791 = vmatprep.subr.bf16.mxu0 %v7280_v19  ;;  %v4600_v43 = vld [vmem:[%s6708_s27 + $0x198] sm:$0xff] }
 0x134   : > { %5269 = vmatmul.mubr.msk.f32.gmra.mrb[4].mxu1 %vm388_vm0, %v6973_v17 }
 0x135   : > { %5493 = vmatmul.mubr.msk.f32.gmra.mrb[4].mxu0 %vm388_vm0, %v7035_v35  ;;  %5271 = vmatprep.mubr.msk.f32.mxu1 %vm388_vm0, %v6979_v20 }
 0x136   : > { %5495 = vmatprep.mubr.msk.f32.mxu0 %vm388_vm0, %v7043_v47 }
 0x138   : > { %5272 = vmatmul.mubr.msk.f32.gmra.mrb[6].mxu1 %vm388_vm0, %v6998_v26 }
 0x139   : > { %5496 = vmatmul.mubr.msk.f32.gmra.mrb[6].mxu0 %vm388_vm0, %v7055_v0  ;;  %5274 = vmatprep.mubr.msk.f32.mxu1 %vm388_vm0, %v7004_v28 }
 0x13a   : > { %5498 = vmatprep.mubr.msk.f32.mxu0 %vm388_vm0, %v7063_v3 }
 0x13c   : > { %5275 = vmatmul.mubr.msk.f32.gmra.mrb[8].mxu1 %vm388_vm0, %v7020_v32 }
 0x13d   : > { %5499 = vmatmul.mubr.msk.f32.gmra.mrb[8].mxu0 %vm388_vm0, %v7075_v5  ;;  %5277 = vmatprep.mubr.msk.f32.mxu1 %vm388_vm0, %v7026_v34 }
 0x13e   : > { %5501 = vmatprep.mubr.msk.f32.mxu0 %vm388_vm0, %v7083_v10 }
 0x140   : > { %5278 = vmatmul.mubr.msk.f32.gmra.mrb[10].mxu1 %vm388_vm0, %v7040_v45 }
 0x141   : > { %5502 = vmatmul.mubr.msk.f32.gmra.mrb[10].mxu0 %vm388_vm0, %v7095_v12  ;;  %5280 = vmatprep.mubr.msk.f32.mxu1 %vm388_vm0, %v7046_v48 }
 0x142   : > { %5504 = vmatprep.mubr.msk.f32.mxu0 %vm388_vm0, %v7103_v15 }
 0x144   : > { %5281 = vmatmul.mubr.msk.f32.gmra.mrb[12].mxu1 %vm388_vm0, %v7060_v2 }
 0x145   : > { %5505 = vmatmul.mubr.msk.f32.gmra.mrb[12].mxu0 %vm388_vm0, %v7115_v63  ;;  %5283 = vmatprep.mubr.msk.f32.mxu1 %vm388_vm0, %v7066_v4 }
 0x146   : > { %5507 = vmatprep.mubr.msk.f32.mxu0 %vm388_vm0, %v7123_v61 }
 0x148   : > { %5284 = vmatmul.mubr.msk.f32.gmra.mrb[14].mxu1 %vm388_vm0, %v7080_v6 }
 0x149   : > { %5508 = vmatmul.mubr.msk.f32.gmra.mrb[14].mxu0 %vm388_vm0, %v7135_v59  ;;  %5286 = vmatprep.mubr.msk.f32.mxu1 %vm388_vm0, %v7086_v11 }
 0x14a   : > { %5510 = vmatprep.mubr.msk.f32.mxu0 %vm388_vm0, %v7143_v57 }
 0x14c   : > { %5287 = vmatmul.mubr.msk.f32.gmra.mrb[16].mxu1 %vm388_vm0, %v7100_v13 }
 0x14d   : > { %5511 = vmatmul.mubr.msk.f32.gmra.mrb[16].mxu0 %vm388_vm0, %v7155_v55  ;;  %5289 = vmatprep.mubr.msk.f32.mxu1 %vm388_vm0, %v7106_v16 }
 0x14e   : > { %5513 = vmatprep.mubr.msk.f32.mxu0 %vm388_vm0, %v7163_v53 }
 0x150   : > { %5290 = vmatmul.mubr.msk.f32.gmra.mrb[18].mxu1 %vm388_vm0, %v7120_v62 }
 0x151   : > { %5514 = vmatmul.mubr.msk.f32.gmra.mrb[18].mxu0 %vm388_vm0, %v7175_v51  ;;  %5292 = vmatprep.mubr.msk.f32.mxu1 %vm388_vm0, %v7126_v60 }
 0x152   : > { %5516 = vmatprep.mubr.msk.f32.mxu0 %vm388_vm0, %v7183_v49 }
 0x154   : > { %5293 = vmatmul.mubr.msk.f32.gmra.mrb[20].mxu1 %vm388_vm0, %v7140_v58 }
 0x155   : > { %5517 = vmatmul.mubr.msk.f32.gmra.mrb[20].mxu0 %vm388_vm0, %v7195_v44  ;;  %5295 = vmatprep.mubr.msk.f32.mxu1 %vm388_vm0, %v7146_v56 }
 0x156   : > { %5519 = vmatprep.mubr.msk.f32.mxu0 %vm388_vm0, %v7203_v42 }
 0x158   : > { %5296 = vmatmul.mubr.msk.f32.gmra.mrb[22].mxu1 %vm388_vm0, %v7160_v54 }
 0x159   : > { %5520 = vmatmul.mubr.msk.f32.gmra.mrb[22].mxu0 %vm388_vm0, %v7215_v40  ;;  %5298 = vmatprep.mubr.msk.f32.mxu1 %vm388_vm0, %v7166_v52 }
 0x15a   : > { %5522 = vmatprep.mubr.msk.f32.mxu0 %vm388_vm0, %v7223_v38 }
 0x15c   : > { %5299 = vmatmul.mubr.msk.f32.gmra.mrb[24].mxu1 %vm388_vm0, %v7180_v50 }
 0x15d   : > { %5523 = vmatmul.mubr.msk.f32.gmra.mrb[24].mxu0 %vm388_vm0, %v7235_v36  ;;  %5301 = vmatprep.mubr.msk.f32.mxu1 %vm388_vm0, %v7942_v24 }
 0x15e   : > { %5525 = vmatprep.mubr.msk.f32.mxu0 %vm388_vm0, %v7943_v30 }
 0x160   : > { %5302 = vmatmul.mubr.msk.f32.gmra.mrb[26].mxu1 %vm388_vm0, %v7944_v37  ;;  %v7951_v37 = vld [vmem:[#allocation49_spill] sm:$0xff] }
 0x161   : > { %5526 = vmatmul.mubr.msk.f32.gmra.mrb[26].mxu0 %vm388_vm0, %v7255_v23  ;;  %5304 = vmatprep.mubr.msk.f32.mxu1 %vm388_vm0, %v7945_v39  ;;  %v5794_v39 = vpack.c.bf16 %v3413_v22, %v3412_v21 }
 0x162   : > { %5528 = vmatprep.mubr.msk.f32.mxu0 %vm388_vm0, %v7380_v31 }
 0x164   : > { %5305 = vmatmul.mubr.msk.f32.gmra.mrb[28].mxu1 %vm388_vm0, %v7946_v46  ;;  %v7950_v46 = vld [vmem:[#allocation18_spill] sm:$0xff] }
 0x165   : > { %5529 = vmatmul.mubr.msk.f32.gmra.mrb[28].mxu0 %vm388_vm0, %v7391_v41  ;;  %5307 = vmatprep.mubr.msk.f32.mxu1 %vm388_vm0, %v7947_v1  ;;  %v7952_v1 = vld [vmem:[#allocation19_spill] sm:$0xff] }
 0x166   : > { %5531 = vmatprep.mubr.msk.f32.mxu0 %vm388_vm0, %v4600_v43  ;;  %v7953_v43 = vld [vmem:[#allocation20_spill] sm:$0xff] }
 0x168   : > { %5308 = vmatmul.mubr.msk.f32.gmra.mrb[30].mxu1 %vm388_vm0, %v7948_v8 }
 0x169   : > { %5532 = vmatmul.mubr.msk.f32.gmra.mrb[30].mxu0 %vm388_vm0, %v4601_v7  ;;  %5318 = vmatprep.mubr.msk.f32.mxu1 %vm388_vm0, %v7949_v14  ;;  %v7954_v14 = vld [vmem:[#allocation21_spill] sm:$0xff] }
 0x16a   : > { %5542 = vmatprep.mubr.msk.f32.mxu0 %vm388_vm0, %v7950_v46  ;;  %v3853_v7 = vld [vmem:[#allocation8 + $0x78] sm:$0xff] }
 0x16c   : > { %5319 = vmatmul.mubr.msk.f32.vlgmr.msra.gmra.mrb[0].mxu1 %vm388_vm0, %v7951_v37  ;;  %v7955_v37 = vld [vmem:[#allocation22_spill] sm:$0xff] }
 0x16d   : > { %5543 = vmatmul.mubr.msk.f32.vlgmr.msra.gmra.mrb[0].mxu0 %vm388_vm0, %v7952_v1  ;;  %5321 = vmatprep.mubr.msk.f32.mxu1 %vm388_vm0, %v6976_v18  ;;  %v7956_v18 = vld [vmem:[#allocation23_spill] sm:$0xff] }
 0x16e   : > { %5793 = vmatpush3.bf16.msra.mxu0 %v7280_v19  ;;  %5545 = vmatprep.mubr.msk.f32.mxu0 %vm388_vm0, %v7953_v43  ;;  %v7959_v19 = vld [vmem:[#allocation26_spill] sm:$0xff]  ;;  %v3852_v1 = vld [vmem:[#allocation8 + $0x70] sm:$0xff] }
 0x16f   : > { %5795 = vmatprep.subr.bf16.mxu0 %v5794_v39 }
 0x170   : > { %5322 = vmatmul.mubr.msk.f32.gmra.mrb[2].mxu1 %vm388_vm0, %v6993_v25  ;;  %v7957_v25 = vld [vmem:[#allocation24_spill] sm:$0xff] }
 0x171   : > { %5546 = vmatmul.mubr.msk.f32.gmra.mrb[2].mxu0 %vm388_vm0, %v7954_v14  ;;  %5324 = vmatprep.mubr.msk.f32.mxu1 %vm388_vm0, %v7001_v27  ;;  %v7958_v27 = vld [vmem:[#allocation25_spill] sm:$0xff] }
 0x172   : > { %5548 = vmatprep.mubr.msk.f32.mxu0 %vm388_vm0, %v7955_v37  ;;  %5797 = vmatpush3.bf16.msra.mxu0 %v5794_v39  ;;  %v3850_v39 = vld [vmem:[#allocation8 + $0x60] sm:$0xff] }
 0x174   : > { %5325 = vmatmul.mubr.msk.f32.gmra.mrb[4].mxu1 %vm388_vm0, %v7015_v29  ;;  %v7960_v29 = vld [vmem:[#allocation27_spill] sm:$0xff] }
 0x175   : > { %5549 = vmatmul.mubr.msk.f32.gmra.mrb[4].mxu0 %vm388_vm0, %v7956_v18  ;;  %5327 = vmatprep.mubr.msk.f32.mxu1 %vm388_vm0, %v7023_v33  ;;  %v7961_v33 = vld [vmem:[#allocation28_spill] sm:$0xff] }
 0x176   : > { %5551 = vmatprep.mubr.msk.f32.mxu0 %vm388_vm0, %v7957_v25 }
 0x178   : > { %5328 = vmatmul.mubr.msk.f32.gmra.mrb[6].mxu1 %vm388_vm0, %v7035_v35  ;;  %v7962_v35 = vld [vmem:[#allocation29_spill] sm:$0xff] }
 0x179   : > { %5552 = vmatmul.mubr.msk.f32.gmra.mrb[6].mxu0 %vm388_vm0, %v7958_v27  ;;  %5330 = vmatprep.mubr.msk.f32.mxu1 %vm388_vm0, %v7043_v47  ;;  %v7963_v47 = vld [vmem:[#allocation30_spill] sm:$0xff] }
 0x17a   : > { %5554 = vmatprep.mubr.msk.f32.mxu0 %vm388_vm0, %v7959_v19 }
 0x17c   : > { %5331 = vmatmul.mubr.msk.f32.gmra.mrb[8].mxu1 %vm388_vm0, %v7055_v0  ;;  %v7964_v0 = vld [vmem:[#allocation31_spill] sm:$0xff] }
 0x17d   : > { %5555 = vmatmul.mubr.msk.f32.gmra.mrb[8].mxu0 %vm388_vm0, %v7960_v29  ;;  %5333 = vmatprep.mubr.msk.f32.mxu1 %vm388_vm0, %v7063_v3  ;;  %v7965_v3 = vld [vmem:[#allocation32_spill] sm:$0xff] }
 0x17e   : > { %5557 = vmatprep.mubr.msk.f32.mxu0 %vm388_vm0, %v7961_v33 }
 0x180   : > { %5334 = vmatmul.mubr.msk.f32.gmra.mrb[10].mxu1 %vm388_vm0, %v7075_v5  ;;  %v7966_v5 = vld [vmem:[#allocation33_spill] sm:$0xff] }
 0x181   : > { %5558 = vmatmul.mubr.msk.f32.gmra.mrb[10].mxu0 %vm388_vm0, %v7962_v35  ;;  %5336 = vmatprep.mubr.msk.f32.mxu1 %vm388_vm0, %v7083_v10  ;;  %v7967_v10 = vld [vmem:[#allocation34_spill] sm:$0xff] }
 0x182   : > { %5560 = vmatprep.mubr.msk.f32.mxu0 %vm388_vm0, %v7963_v47 }
 0x184   : > { %5337 = vmatmul.mubr.msk.f32.gmra.mrb[12].mxu1 %vm388_vm0, %v7095_v12  ;;  %v7968_v12 = vld [vmem:[#allocation35_spill] sm:$0xff] }
 0x185   : > { %5561 = vmatmul.mubr.msk.f32.gmra.mrb[12].mxu0 %vm388_vm0, %v7964_v0  ;;  %5339 = vmatprep.mubr.msk.f32.mxu1 %vm388_vm0, %v7103_v15  ;;  %v7969_v15 = vld [vmem:[#allocation36_spill] sm:$0xff] }
 0x186   : > { %5563 = vmatprep.mubr.msk.f32.mxu0 %vm388_vm0, %v7965_v3 }
 0x188   : > { %5340 = vmatmul.mubr.msk.f32.gmra.mrb[14].mxu1 %vm388_vm0, %v7115_v63  ;;  %v7970_v63 = vld [vmem:[#allocation37_spill] sm:$0xff] }
 0x189   : > { %5564 = vmatmul.mubr.msk.f32.gmra.mrb[14].mxu0 %vm388_vm0, %v7966_v5  ;;  %5342 = vmatprep.mubr.msk.f32.mxu1 %vm388_vm0, %v7123_v61  ;;  %v7971_v61 = vld [vmem:[#allocation38_spill] sm:$0xff] }
 0x18a   : > { %5566 = vmatprep.mubr.msk.f32.mxu0 %vm388_vm0, %v7967_v10 }
 0x18c   : > { %5343 = vmatmul.mubr.msk.f32.gmra.mrb[16].mxu1 %vm388_vm0, %v7135_v59  ;;  %v7972_v59 = vld [vmem:[#allocation39_spill] sm:$0xff] }
 0x18d   : > { %5567 = vmatmul.mubr.msk.f32.gmra.mrb[16].mxu0 %vm388_vm0, %v7968_v12  ;;  %5345 = vmatprep.mubr.msk.f32.mxu1 %vm388_vm0, %v7143_v57  ;;  %v7978_v57 = vld [vmem:[#allocation45_spill] sm:$0xff] }
 0x18e   : > { %5569 = vmatprep.mubr.msk.f32.mxu0 %vm388_vm0, %v7969_v15 }
 0x190   : > { %5346 = vmatmul.mubr.msk.f32.gmra.mrb[18].mxu1 %vm388_vm0, %v7155_v55  ;;  %v7973_v55 = vld [vmem:[#allocation40_spill] sm:$0xff] }
 0x191   : > { %5570 = vmatmul.mubr.msk.f32.gmra.mrb[18].mxu0 %vm388_vm0, %v7970_v63  ;;  %5348 = vmatprep.mubr.msk.f32.mxu1 %vm388_vm0, %v7163_v53  ;;  %v7974_v53 = vld [vmem:[#allocation41_spill] sm:$0xff] }
 0x192   : > { %5572 = vmatprep.mubr.msk.f32.mxu0 %vm388_vm0, %v7971_v61 }
 0x194   : > { %5349 = vmatmul.mubr.msk.f32.gmra.mrb[20].mxu1 %vm388_vm0, %v7175_v51  ;;  %v7975_v51 = vld [vmem:[#allocation42_spill] sm:$0xff] }
 0x195   : > { %5573 = vmatmul.mubr.msk.f32.gmra.mrb[20].mxu0 %vm388_vm0, %v7972_v59  ;;  %5351 = vmatprep.mubr.msk.f32.mxu1 %vm388_vm0, %v7183_v49  ;;  %v7976_v49 = vld [vmem:[#allocation43_spill] sm:$0xff] }
 0x196   : > { %5575 = vmatprep.mubr.msk.f32.mxu0 %vm388_vm0, %v7973_v55 }
 0x198   : > { %5352 = vmatmul.mubr.msk.f32.gmra.mrb[22].mxu1 %vm388_vm0, %v7195_v44  ;;  %v7977_v44 = vld [vmem:[#allocation44_spill] sm:$0xff] }
 0x199   : > { %5576 = vmatmul.mubr.msk.f32.gmra.mrb[22].mxu0 %vm388_vm0, %v7974_v53  ;;  %5354 = vmatprep.mubr.msk.f32.mxu1 %vm388_vm0, %v7203_v42  ;;  %v7979_v42 = vld [vmem:[#allocation46_spill] sm:$0xff] }
 0x19a   : > { %5578 = vmatprep.mubr.msk.f32.mxu0 %vm388_vm0, %v7975_v51 }
 0x19c   : > { %5355 = vmatmul.mubr.msk.f32.gmra.mrb[24].mxu1 %vm388_vm0, %v7215_v40  ;;  %v4664_v40 = vld [vmem:[%s6708_s27 + $0x199] sm:$0xff] }
 0x19d   : > { %5579 = vmatmul.mubr.msk.f32.gmra.mrb[24].mxu0 %vm388_vm0, %v7976_v49  ;;  %5357 = vmatprep.mubr.msk.f32.mxu1 %vm388_vm0, %v7223_v38  ;;  %v7980_v38 = vld [vmem:[#allocation47_spill] sm:$0xff] }
 0x19e   : > { %5581 = vmatprep.mubr.msk.f32.mxu0 %vm388_vm0, %v7977_v44 }
 0x1a0   : > { %5358 = vmatmul.mubr.msk.f32.gmra.mrb[26].mxu1 %vm388_vm0, %v7235_v36  ;;  %v4665_v36 = vld [vmem:[%s6708_s27 + $0x1a1] sm:$0xff] }
 0x1a1   : > { %5582 = vmatmul.mubr.msk.f32.gmra.mrb[26].mxu0 %vm388_vm0, %v7978_v57  ;;  %5360 = vmatprep.mubr.msk.f32.mxu1 %vm388_vm0, %v7943_v30  ;;  %v3849_v30 = vld [vmem:[#allocation8 + $0x58] sm:$0xff] }
 0x1a2   : > { %5584 = vmatprep.mubr.msk.f32.mxu0 %vm388_vm0, %v7979_v42 }
 0x1a4   : > { %5361 = vmatmul.mubr.msk.f32.gmra.mrb[28].mxu1 %vm388_vm0, %v7255_v23  ;;  %v3838_v23 = vld [vmem:[#allocation8] sm:$0xff] }
 0x1a5   : > { %5585 = vmatmul.mubr.msk.f32.gmra.mrb[28].mxu0 %vm388_vm0, %v7980_v38  ;;  %5363 = vmatprep.mubr.msk.f32.mxu1 %vm388_vm0, %v7380_v31 }
 0x1a6   : > { %5587 = vmatprep.mubr.msk.f32.mxu0 %vm388_vm0, %v4664_v40 }
 0x1a8   : > { %5364 = vmatmul.mubr.msk.f32.gmra.mrb[30].mxu1 %vm388_vm0, %v7391_v41  ;;  %v3851_v41 = vld [vmem:[#allocation8 + $0x68] sm:$0xff] }
 0x1a9   : > { %5588 = vmatmul.mubr.msk.f32.gmra.mrb[30].mxu0 %vm388_vm0, %v4665_v36  ;;  %v5822_v46 = vpack.c.bf16 %v3851_v41, %v3850_v39 }
 0x1aa   : > { %5598 = vmatprep.mubr.msk.f32.mxu0 %vm388_vm0, %v6959_v9  ;;  %v3839_v9 = vld [vmem:[#allocation8 + $0x8] sm:$0xff] }
 0x1ad   : > { %5599 = vmatmul.mubr.msk.f32.vlgmr.msra.gmra.mrb[0].mxu0 %vm388_vm0, %v6973_v17  ;;  %v5798_v17 = vpack.c.bf16 %v3839_v9, %v3838_v23  ;;  %v7644_v9 = vld [vmem:[#allocation7] ss:$0 sm:$0xff] }
 0x1ae   : > { %5601 = vmatprep.mubr.msk.f32.mxu0 %vm388_vm0, %v6979_v20  ;;  %v3840_v20 = vld [vmem:[#allocation8 + $0x10] sm:$0xff] }
 0x1af   : > { %5799 = vmatprep.subr.bf16.mxu1 %v5798_v17 }
 0x1b0   : > { %5801 = vmatpush3.bf16.msra.mxu1 %v5798_v17 }
 0x1b1   : > { %5602 = vmatmul.mubr.msk.f32.gmra.mrb[2].mxu0 %vm388_vm0, %v6998_v26  ;;  %v3841_v26 = vld [vmem:[#allocation8 + $0x18] sm:$0xff] }
 0x1b2   : > { %5604 = vmatprep.mubr.msk.f32.mxu0 %vm388_vm0, %v7004_v28  ;;  %v5802_v28 = vpack.c.bf16 %v3841_v26, %v3840_v20 }
 0x1b4   : > { %5803 = vmatprep.subr.bf16.mxu1 %v5802_v28 }
 0x1b5   : > { %5605 = vmatmul.mubr.msk.f32.gmra.mrb[4].mxu0 %vm388_vm0, %v7020_v32  ;;  %5805 = vmatpush3.bf16.msra.mxu1 %v5802_v28  ;;  %v3844_v32 = vld [vmem:[#allocation8 + $0x30] sm:$0xff] }
 0x1b6   : > { %5607 = vmatprep.mubr.msk.f32.mxu0 %vm388_vm0, %v7026_v34  ;;  %v3845_v34 = vld [vmem:[#allocation8 + $0x38] sm:$0xff] }
 0x1b9   : > { %5608 = vmatmul.mubr.msk.f32.gmra.mrb[6].mxu0 %vm388_vm0, %v7040_v45  ;;  %v5810_v45 = vpack.c.bf16 %v3845_v34, %v3844_v32 }
 0x1ba   : > { %5610 = vmatprep.mubr.msk.f32.mxu0 %vm388_vm0, %v7046_v48  ;;  %v7985_v48 = vld [vmem:[#allocation57_spill] sm:$0xff] }
 0x1bd   : > { %5611 = vmatmul.mubr.msk.f32.gmra.mrb[8].mxu0 %vm388_vm0, %v7060_v2  ;;  %v4728_v2 = vld [vmem:[%s6708_s27 + $0x19a] sm:$0xff] }
 0x1be   : > { %5613 = vmatprep.mubr.msk.f32.mxu0 %vm388_vm0, %v7066_v4  ;;  %v7986_v4 = vld [vmem:[#allocation58_spill] sm:$0xff] }
 0x1c1   : > { %5614 = vmatmul.mubr.msk.f32.gmra.mrb[10].mxu0 %vm388_vm0, %v7080_v6  ;;  %v4729_v6 = vld [vmem:[%s6708_s27 + $0x1a2] sm:$0xff] }
 0x1c2   : > { %5616 = vmatprep.mubr.msk.f32.mxu0 %vm388_vm0, %v7086_v11  ;;  %v3846_v11 = vld [vmem:[#allocation8 + $0x40] sm:$0xff] }
 0x1c5   : > { %5617 = vmatmul.mubr.msk.f32.gmra.mrb[12].mxu0 %vm388_vm0, %v7100_v13  ;;  %v3847_v13 = vld [vmem:[#allocation8 + $0x48] sm:$0xff] }
 0x1c6   : > { %5619 = vmatprep.mubr.msk.f32.mxu0 %vm388_vm0, %v7106_v16  ;;  %v5814_v16 = vpack.c.bf16 %v3847_v13, %v3846_v11 }
 0x1c9   : > { %5620 = vmatmul.mubr.msk.f32.gmra.mrb[14].mxu0 %vm388_vm0, %v7120_v62 }
 0x1ca   : > { %5622 = vmatprep.mubr.msk.f32.mxu0 %vm388_vm0, %v7126_v60  ;;  %v7981_v60 = vld [vmem:[#allocation51_spill] sm:$0xff] }
 0x1cd   : > { %5623 = vmatmul.mubr.msk.f32.gmra.mrb[16].mxu0 %vm388_vm0, %v7140_v58  ;;  %v3842_v58 = vld [vmem:[#allocation8 + $0x20] sm:$0xff] }
 0x1ce   : > { %5625 = vmatprep.mubr.msk.f32.mxu0 %vm388_vm0, %v7146_v56  ;;  %v3843_v56 = vld [vmem:[#allocation8 + $0x28] sm:$0xff] }
 0x1cf   : > { %v5806_v62 = vpack.c.bf16 %v3843_v56, %v3842_v58 }
 0x1d1   : > { %5626 = vmatmul.mubr.msk.f32.gmra.mrb[18].mxu0 %vm388_vm0, %v7160_v54  ;;  %v7982_v54 = vld [vmem:[#allocation52_spill] sm:$0xff]  ;;  %5807 = vmatprep.subr.bf16.mxu1 %v5806_v62 }
 0x1d2   : > { %5628 = vmatprep.mubr.msk.f32.mxu0 %vm388_vm0, %v7166_v52  ;;  %5809 = vmatpush3.bf16.msra.mxu1 %v5806_v62  ;;  %v7983_v52 = vld [vmem:[#allocation53_spill] sm:$0xff] }
 0x1d3   : > { %5811 = vmatprep.subr.bf16.mxu1 %v5810_v45 }
 0x1d5   : > { %5629 = vmatmul.mubr.msk.f32.gmra.mrb[20].mxu0 %vm388_vm0, %v7180_v50  ;;  %v7984_v50 = vld [vmem:[#allocation54_spill] sm:$0xff] }
 0x1d6   : > { %5631 = vmatprep.mubr.msk.f32.mxu0 %vm388_vm0, %v7942_v24  ;;  %5813 = vmatpush3.bf16.msra.mxu1 %v5810_v45  ;;  %v3848_v24 = vld [vmem:[#allocation8 + $0x50] sm:$0xff] }
 0x1d7   : > { %5815 = vmatprep.subr.bf16.mxu1 %v5814_v16  ;;  %v5818_v31 = vpack.c.bf16 %v3849_v30, %v3848_v24 }
 0x1d9   : > { %5632 = vmatmul.mubr.msk.f32.gmra.mrb[22].mxu0 %vm388_vm0, %v7981_v60 }
 0x1da   : > { %5634 = vmatprep.mubr.msk.f32.mxu0 %vm388_vm0, %v7982_v54  ;;  %5817 = vmatpush3.bf16.msra.mxu1 %v5814_v16 }
 0x1db   : > { %5819 = vmatprep.subr.bf16.mxu1 %v5818_v31 }
 0x1dd   : > { %5635 = vmatmul.mubr.msk.f32.gmra.mrb[24].mxu0 %vm388_vm0, %v7983_v52 }
 0x1de   : > { %5637 = vmatprep.mubr.msk.f32.mxu0 %vm388_vm0, %v7984_v50  ;;  %5821 = vmatpush3.bf16.msra.mxu1 %v5818_v31 }
 0x1df   : > { %5823 = vmatprep.subr.bf16.mxu1 %v5822_v46 }
 0x1e1   : > { %5638 = vmatmul.mubr.msk.f32.gmra.mrb[26].mxu0 %vm388_vm0, %v7948_v8  ;;  %v5826_v8 = vpack.c.bf16 %v3853_v7, %v3852_v1 }
 0x1e2   : > { %5640 = vmatprep.mubr.msk.f32.mxu0 %vm388_vm0, %v7985_v48  ;;  %5825 = vmatpush3.bf16.msra.mxu1 %v5822_v46 }
 0x1e3   : > { %5827 = vmatprep.subr.bf16.mxu1 %v5826_v8 }
 0x1e5   : > { %5641 = vmatmul.mubr.msk.f32.gmra.mrb[28].mxu0 %vm388_vm0, %v7986_v4 }
 0x1e6   : > { %5643 = vmatprep.mubr.msk.f32.mxu0 %vm388_vm0, %v4728_v2  ;;  %5829 = vmatpush3.bf16.msra.mxu1 %v5826_v8 }
 0x1e9   : > { %5644 = vmatmul.mubr.msk.f32.gmra.mrb[30].mxu0 %vm388_vm0, %v4729_v6 }
 0x23f   : > { %v5320_v21 = vpop.f32.mrb[0].mxu1 }
 0x240   : > { %v1623_v22 = vpop.f32.mrb[1].mxu1 }
 0x243   : > { %v5323_v43 = vpop.f32.mrb[2].mxu1 }
 0x244   : > { %v1633_v14 = vpop.f32.mrb[3].mxu1 }
 0x247   : > { %v5326_v37 = vpop.f32.mrb[4].mxu1 }
 0x248   : > { %v1643_v18 = vpop.f32.mrb[5].mxu1 }
 0x24b   : > { %v5329_v25 = vpop.f32.mrb[6].mxu1 }
 0x24c   : > { %v1653_v27 = vpop.f32.mrb[7].mxu1 }
 0x24f   : > { %v5332_v19 = vpop.f32.mrb[8].mxu1 }
 0x250   : > { %v7598_v29 = vpop.f32.mrb[9].mxu1 }
 0x253   : > { %v7600_v33 = vpop.f32.mrb[10].mxu1 }
 0x254   : > { %v7602_v35 = vpop.f32.mrb[11].mxu1 }
 0x257   : > { %v7604_v47 = vpop.f32.mrb[12].mxu1 }
 0x258   : > { %v7606_v0 = vpop.f32.mrb[13].mxu1 }
 0x25b   : > { %v7608_v3 = vpop.f32.mrb[14].mxu1 }
 0x25c   : > { %v7610_v5 = vpop.f32.mrb[15].mxu1 }
 0x25f   : > { %v7612_v10 = vpop.f32.mrb[16].mxu1 }
 0x260   : > { %v7614_v12 = vpop.f32.mrb[17].mxu1 }
 0x263   : > { %v7616_v15 = vpop.f32.mrb[18].mxu1 }
 0x264   : > { %v7618_v63 = vpop.f32.mrb[19].mxu1 }
 0x267   : > { %v7620_v61 = vpop.f32.mrb[20].mxu1 }
 0x268   : > { %v7622_v59 = vpop.f32.mrb[21].mxu1 }
 0x26b   : > { %v7624_v55 = vpop.f32.mrb[22].mxu1 }
 0x26c   : > { %v7626_v53 = vpop.f32.mrb[23].mxu1 }
 0x26f   : > { %v7628_v51 = vpop.f32.mrb[24].mxu1 }
 0x270   : > { %v7630_v49 = vpop.f32.mrb[25].mxu1 }
 0x273   : > { %v7632_v44 = vpop.f32.mrb[26].mxu1 }
 0x274   : > { %v7634_v57 = vpop.f32.mrb[27].mxu1 }
 0x277   : > { %v7636_v42 = vpop.f32.mrb[28].mxu1 }
 0x278   : > { %v7638_v40 = vpop.f32.mrb[29].mxu1 }
 0x27b   : > { %v7640_v38 = vpop.f32.mrb[30].mxu1 }
 0x27c   : > { %v7642_v36 = vpop.f32.mrb[31].mxu1 }
 0x280   : > { %v5600_v23 = vpop.f32.mrb[0].mxu0 }
 0x281   : > { %v5830_v17 = vadd.f32 %v5600_v23, %v5320_v21  ;;  %v3576_v20 = vpop.f32.mrb[1].mxu0 }
 0x282   : > { %v5831_v26 = vadd.f32 %v3576_v20, %v1623_v22 }
 0x283   : > { %v3775_v28 = vadd.f32 %v5830_v17, %v7644_v9 }
 0x284   : > { %v3774_v58 = vadd.f32 %v5831_v26, %v7644_v9  ;;  %v5603_v56 = vpop.f32.mrb[2].mxu0 }
 0x285   : > { %v5832_v60 = vadd.f32 %v5603_v56, %v5323_v43  ;;  %v3586_v62 = vpop.f32.mrb[3].mxu0  ;;  %v3807_v50 = vmax.f32 %v3775_v28, 0.0 }
 0x286   : > { %v3806_v54 = vmax.f32 %v3774_v58, 0.0  ;;  %v5833_v52 = vadd.f32 %v3586_v62, %v1633_v14 }
 0x287   : > { %v3777_v32 = vadd.f32 %v5832_v60, %v7644_v9 }
 0x288   : > { %v3776_v34 = vadd.f32 %v5833_v52, %v7644_v9  ;;  %v5606_v45 = vpop.f32.mrb[4].mxu0  ;;  %5678 = vmatprep.mubr.f32.mxu1 %v3806_v54 }
 0x289   : > { %v5834_v48 = vadd.f32 %v5606_v45, %v5326_v37  ;;  %v3596_v2 = vpop.f32.mrb[5].mxu0  ;;  %5679 = vmatmul.mubr.f32.vlgmr.msra.gmra.mrb[32].mxu1 %v3807_v50  ;;  %v3809_v11 = vmax.f32 %v3777_v32, 0.0 }
 0x28a   : > { %v3808_v4 = vmax.f32 %v3776_v34, 0.0  ;;  %v5835_v6 = vadd.f32 %v3596_v2, %v1643_v18 }
 0x28b   : > { %v3779_v13 = vadd.f32 %v5834_v48, %v7644_v9 }
 0x28c   : > { %v3778_v16 = vadd.f32 %v5835_v6, %v7644_v9  ;;  %v5609_v24 = vpop.f32.mrb[6].mxu0  ;;  %5681 = vmatprep.mubr.f32.mxu1 %v3808_v4 }
 0x28d   : > { %v5836_v30 = vadd.f32 %v5609_v24, %v5329_v25  ;;  %v3606_v31 = vpop.f32.mrb[7].mxu0  ;;  %5682 = vmatmul.mubr.f32.gmra.mrb[34].mxu1 %v3809_v11  ;;  %v3811_v46 = vmax.f32 %v3779_v13, 0.0 }
 0x28e   : > { %v3810_v39 = vmax.f32 %v3778_v16, 0.0  ;;  %v5837_v41 = vadd.f32 %v3606_v31, %v1653_v27 }
 0x28f   : > { %v3781_v1 = vadd.f32 %v5836_v30, %v7644_v9 }
 0x290   : > { %v3780_v7 = vadd.f32 %v5837_v41, %v7644_v9  ;;  %v5612_v8 = vpop.f32.mrb[8].mxu0  ;;  %5684 = vmatprep.mubr.f32.mxu1 %v3810_v39 }
 0x291   : > { %v5838_v21 = vadd.f32 %v5612_v8, %v5332_v19  ;;  %v3616_v22 = vpop.f32.mrb[9].mxu0  ;;  %5685 = vmatmul.mubr.f32.gmra.mrb[36].mxu1 %v3811_v46  ;;  %v3813_v37 = vmax.f32 %v3781_v1, 0.0 }
 0x292   : > { %v3812_v43 = vmax.f32 %v3780_v7, 0.0  ;;  %v5839_v14 = vadd.f32 %v3616_v22, %v7598_v29 }
 0x293   : > { %v3783_v18 = vadd.f32 %v5838_v21, %v7644_v9 }
 0x294   : > { %v3782_v25 = vadd.f32 %v5839_v14, %v7644_v9  ;;  %v5615_v23 = vpop.f32.mrb[10].mxu0  ;;  %5687 = vmatprep.mubr.f32.mxu1 %v3812_v43 }
 0x295   : > { %v5840_v27 = vadd.f32 %v5615_v23, %v7600_v33  ;;  %v3626_v17 = vpop.f32.mrb[11].mxu0  ;;  %5688 = vmatmul.mubr.f32.gmra.mrb[38].mxu1 %v3813_v37  ;;  %v3815_v19 = vmax.f32 %v3783_v18, 0.0 }
 0x296   : > { %v3814_v20 = vmax.f32 %v3782_v25, 0.0  ;;  %v5841_v26 = vadd.f32 %v3626_v17, %v7602_v35 }
 0x297   : > { %v3785_v28 = vadd.f32 %v5840_v27, %v7644_v9 }
 0x298   : > { %v3784_v58 = vadd.f32 %v5841_v26, %v7644_v9  ;;  %v5618_v29 = vpop.f32.mrb[12].mxu0  ;;  %5690 = vmatprep.mubr.f32.mxu1 %v3814_v20 }
 0x299   : > { %v5842_v56 = vadd.f32 %v5618_v29, %v7604_v47  ;;  %v3636_v60 = vpop.f32.mrb[13].mxu0  ;;  %5691 = vmatmul.mubr.f32.gmra.mrb[40].mxu1 %v3815_v19  ;;  %v3817_v33 = vmax.f32 %v3785_v28, 0.0 }
 0x29a   : > { %v3816_v62 = vmax.f32 %v3784_v58, 0.0  ;;  %v5843_v54 = vadd.f32 %v3636_v60, %v7606_v0 }
 0x29b   : > { %v3787_v52 = vadd.f32 %v5842_v56, %v7644_v9 }
 0x29c   : > { %v3786_v50 = vadd.f32 %v5843_v54, %v7644_v9  ;;  %v5621_v35 = vpop.f32.mrb[14].mxu0  ;;  %5693 = vmatprep.mubr.f32.mxu1 %v3816_v62 }
 0x29d   : > { %v5844_v32 = vadd.f32 %v5621_v35, %v7608_v3  ;;  %v3646_v34 = vpop.f32.mrb[15].mxu0  ;;  %5694 = vmatmul.mubr.f32.gmra.mrb[42].mxu1 %v3817_v33  ;;  %v3819_v47 = vmax.f32 %v3787_v52, 0.0 }
 0x29e   : > { %v3818_v45 = vmax.f32 %v3786_v50, 0.0  ;;  %v5845_v48 = vadd.f32 %v3646_v34, %v7610_v5 }
 0x29f   : > { %v3789_v2 = vadd.f32 %v5844_v32, %v7644_v9 }
 0x2a0   : > { %v3788_v4 = vadd.f32 %v5845_v48, %v7644_v9  ;;  %v5624_v0 = vpop.f32.mrb[16].mxu0  ;;  %5696 = vmatprep.mubr.f32.mxu1 %v3818_v45 }
 0x2a1   : > { %v5846_v6 = vadd.f32 %v5624_v0, %v7612_v10  ;;  %v3656_v11 = vpop.f32.mrb[17].mxu0  ;;  %5697 = vmatmul.mubr.f32.gmra.mrb[44].mxu1 %v3819_v47  ;;  %v3821_v3 = vmax.f32 %v3789_v2, 0.0 }
 0x2a2   : > { %v3820_v13 = vmax.f32 %v3788_v4, 0.0  ;;  %v5847_v16 = vadd.f32 %v3656_v11, %v7614_v12 }
 0x2a3   : > { %v3791_v24 = vadd.f32 %v5846_v6, %v7644_v9 }
 0x2a4   : > { %v3790_v30 = vadd.f32 %v5847_v16, %v7644_v9  ;;  %v5627_v5 = vpop.f32.mrb[18].mxu0  ;;  %5699 = vmatprep.mubr.f32.mxu1 %v3820_v13 }
 0x2a5   : > { %v5848_v31 = vadd.f32 %v5627_v5, %v7616_v15  ;;  %v3666_v39 = vpop.f32.mrb[19].mxu0  ;;  %5700 = vmatmul.mubr.f32.gmra.mrb[46].mxu1 %v3821_v3  ;;  %v3823_v10 = vmax.f32 %v3791_v24, 0.0  ;;  %v7702_v3 = vld [vmem:[#allocation10] ss:$0 sm:$0xff] }
 0x2a6   : > { %v3822_v41 = vmax.f32 %v3790_v30, 0.0  ;;  %v5849_v46 = vadd.f32 %v3666_v39, %v7618_v63 }
 0x2a7   : > { %v3793_v1 = vadd.f32 %v5848_v31, %v7644_v9 }
 0x2a8   : > { %v3792_v7 = vadd.f32 %v5849_v46, %v7644_v9  ;;  %v5630_v12 = vpop.f32.mrb[20].mxu0  ;;  %5702 = vmatprep.mubr.f32.mxu1 %v3822_v41 }
 0x2a9   : > { %v5850_v8 = vadd.f32 %v5630_v12, %v7620_v61  ;;  %v3676_v21 = vpop.f32.mrb[21].mxu0  ;;  %5703 = vmatmul.mubr.f32.gmra.mrb[48].mxu1 %v3823_v10  ;;  %v3825_v15 = vmax.f32 %v3793_v1, 0.0 }
 0x2aa   : > { %v3824_v22 = vmax.f32 %v3792_v7, 0.0  ;;  %v5851_v43 = vadd.f32 %v3676_v21, %v7622_v59 }
 0x2ab   : > { %v3795_v14 = vadd.f32 %v5850_v8, %v7644_v9 }
 0x2ac   : > { %v3794_v37 = vadd.f32 %v5851_v43, %v7644_v9  ;;  %v5633_v63 = vpop.f32.mrb[22].mxu0  ;;  %5705 = vmatprep.mubr.f32.mxu1 %v3824_v22 }
 0x2ad   : > { %v5852_v18 = vadd.f32 %v5633_v63, %v7624_v55  ;;  %v3686_v25 = vpop.f32.mrb[23].mxu0  ;;  %5706 = vmatmul.mubr.f32.gmra.mrb[50].mxu1 %v3825_v15  ;;  %v3827_v61 = vmax.f32 %v3795_v14, 0.0 }
 0x2ae   : > { %v3826_v23 = vmax.f32 %v3794_v37, 0.0  ;;  %v5853_v27 = vadd.f32 %v3686_v25, %v7626_v53 }
 0x2af   : > { %v3797_v17 = vadd.f32 %v5852_v18, %v7644_v9 }
 0x2b0   : > { %v3796_v20 = vadd.f32 %v5853_v27, %v7644_v9  ;;  %v5636_v59 = vpop.f32.mrb[24].mxu0  ;;  %5708 = vmatprep.mubr.f32.mxu1 %v3826_v23 }
 0x2b1   : > { %v5854_v26 = vadd.f32 %v5636_v59, %v7628_v51  ;;  %v3696_v19 = vpop.f32.mrb[25].mxu0  ;;  %5709 = vmatmul.mubr.f32.gmra.mrb[52].mxu1 %v3827_v61  ;;  %v3829_v55 = vmax.f32 %v3797_v17, 0.0 }
 0x2b2   : > { %v3828_v28 = vmax.f32 %v3796_v20, 0.0  ;;  %v5855_v58 = vadd.f32 %v3696_v19, %v7630_v49 }
 0x2b3   : > { %v3799_v29 = vadd.f32 %v5854_v26, %v7644_v9 }
 0x2b4   : > { %v3798_v56 = vadd.f32 %v5855_v58, %v7644_v9  ;;  %v5639_v53 = vpop.f32.mrb[26].mxu0  ;;  %5711 = vmatprep.mubr.f32.mxu1 %v3828_v28 }
 0x2b5   : > { %v5856_v60 = vadd.f32 %v5639_v53, %v7632_v44  ;;  %v3706_v62 = vpop.f32.mrb[27].mxu0  ;;  %5712 = vmatmul.mubr.f32.gmra.mrb[54].mxu1 %v3829_v55  ;;  %v3831_v51 = vmax.f32 %v3799_v29, 0.0 }
 0x2b6   : > { %v3830_v54 = vmax.f32 %v3798_v56, 0.0  ;;  %v5857_v33 = vadd.f32 %v3706_v62, %v7634_v57 }
 0x2b7   : > { %v3801_v52 = vadd.f32 %v5856_v60, %v7644_v9 }
 0x2b8   : > { %v3800_v50 = vadd.f32 %v5857_v33, %v7644_v9  ;;  %v5642_v49 = vpop.f32.mrb[28].mxu0  ;;  %5714 = vmatprep.mubr.f32.mxu1 %v3830_v54 }
 0x2b9   : > { %v5858_v35 = vadd.f32 %v5642_v49, %v7636_v42  ;;  %v3716_v32 = vpop.f32.mrb[29].mxu0  ;;  %5715 = vmatmul.mubr.f32.gmra.mrb[56].mxu1 %v3831_v51  ;;  %v3833_v44 = vmax.f32 %v3801_v52, 0.0 }
 0x2ba   : > { %v3832_v34 = vmax.f32 %v3800_v50, 0.0  ;;  %v5859_v45 = vadd.f32 %v3716_v32, %v7638_v40 }
 0x2bb   : > { %v3803_v48 = vadd.f32 %v5858_v35, %v7644_v9 }
 0x2bc   : > { %v3802_v47 = vadd.f32 %v5859_v45, %v7644_v9  ;;  %v5645_v57 = vpop.f32.mrb[30].mxu0  ;;  %5717 = vmatprep.mubr.f32.mxu1 %v3832_v34 }
 0x2bd   : > { %v5860_v2 = vadd.f32 %v5645_v57, %v7640_v38  ;;  %v3726_v4 = vpop.f32.mrb[31].mxu0  ;;  %5718 = vmatmul.mubr.f32.gmra.mrb[58].mxu1 %v3833_v44  ;;  %v3835_v6 = vmax.f32 %v3803_v48, 0.0 }
 0x2be   : > { %v3834_v0 = vmax.f32 %v3802_v47, 0.0  ;;  %v5861_v42 = vadd.f32 %v3726_v4, %v7642_v36 }
 0x2bf   : > { %v3805_v11 = vadd.f32 %v5860_v2, %v7644_v9 }
 0x2c0   : > { %v3804_v40 = vadd.f32 %v5861_v42, %v7644_v9  ;;  %5720 = vmatprep.mubr.f32.mxu1 %v3834_v0 }
 0x2c1   : > { %5721 = vmatmul.mubr.f32.gmra.mrb[60].mxu1 %v3835_v6  ;;  %v3837_v16 = vmax.f32 %v3805_v11, 0.0 }
 0x2c2   : > { %v3836_v13 = vmax.f32 %v3804_v40, 0.0 }
 0x2c4   : > { %5723 = vmatprep.mubr.f32.mxu1 %v3836_v13 }
 0x2c5   : > { %5724 = vmatmul.mubr.f32.gmra.mrb[62].mxu1 %v3837_v16 }
 0x35c   : > { %v5680_v38 = vpop.f32.mrb[32].mxu1 }
 0x35d   : > { %v3933_v24 = vadd.f32 %v5680_v38, %v7702_v3  ;;  %v3927_v30 = vpop.f32.mrb[33].mxu1 }
 0x35e   : > { %v3928_v36 = vadd.f32 %v7702_v3, %v3927_v30 }
 0x35f   : > { %4087 = vst [vmem:[%s7706_s28 + $0x8] sm:$0xff] %v3933_v24 }
 0x360   : > { %4086 = vst [vmem:[%s7706_s28] sm:$0xff] %v3928_v36  ;;  %v5683_v9 = vpop.f32.mrb[34].mxu1 }
 0x361   : > { %v3943_v5 = vadd.f32 %v5683_v9, %v7702_v3  ;;  %v3937_v31 = vpop.f32.mrb[35].mxu1 }
 0x362   : > { %v3938_v39 = vadd.f32 %v7702_v3, %v3937_v31 }
 0x363   : > { %4089 = vst [vmem:[%s7706_s28 + $0x18] sm:$0xff] %v3943_v5 }
 0x364   : > { %4088 = vst [vmem:[%s7706_s28 + $0x10] sm:$0xff] %v3938_v39  ;;  %v5686_v41 = vpop.f32.mrb[36].mxu1 }
 0x365   : > { %v3953_v46 = vadd.f32 %v5686_v41, %v7702_v3  ;;  %v3947_v10 = vpop.f32.mrb[37].mxu1 }
 0x366   : > { %v3948_v1 = vadd.f32 %v7702_v3, %v3947_v10 }
 0x367   : > { %4091 = vst [vmem:[%s7706_s28 + $0x28] sm:$0xff] %v3953_v46 }
 0x368   : > { %4090 = vst [vmem:[%s7706_s28 + $0x20] sm:$0xff] %v3948_v1  ;;  %v5689_v7 = vpop.f32.mrb[38].mxu1 }
 0x369   : > { %v3963_v12 = vadd.f32 %v5689_v7, %v7702_v3  ;;  %v3957_v8 = vpop.f32.mrb[39].mxu1 }
 0x36a   : > { %v3958_v21 = vadd.f32 %v7702_v3, %v3957_v8 }
 0x36b   : > { %4093 = vst [vmem:[%s7706_s28 + $0x38] sm:$0xff] %v3963_v12 }
 0x36c   : > { %4092 = vst [vmem:[%s7706_s28 + $0x30] sm:$0xff] %v3958_v21  ;;  %v5692_v22 = vpop.f32.mrb[40].mxu1 }
 0x36d   : > { %v3973_v43 = vadd.f32 %v5692_v22, %v7702_v3  ;;  %v3967_v15 = vpop.f32.mrb[41].mxu1 }
 0x36e   : > { %v3968_v14 = vadd.f32 %v7702_v3, %v3967_v15 }
 0x36f   : > { %4095 = vst [vmem:[%s7706_s28 + $0x48] sm:$0xff] %v3973_v43 }
 0x370   : > { %4094 = vst [vmem:[%s7706_s28 + $0x40] sm:$0xff] %v3968_v14  ;;  %v5695_v37 = vpop.f32.mrb[42].mxu1 }
 0x371   : > { %v3983_v63 = vadd.f32 %v5695_v37, %v7702_v3  ;;  %v3977_v18 = vpop.f32.mrb[43].mxu1 }
 0x372   : > { %v3978_v25 = vadd.f32 %v7702_v3, %v3977_v18 }
 0x373   : > { %4097 = vst [vmem:[%s7706_s28 + $0x58] sm:$0xff] %v3983_v63 }
 0x374   : > { %4096 = vst [vmem:[%s7706_s28 + $0x50] sm:$0xff] %v3978_v25  ;;  %v5698_v23 = vpop.f32.mrb[44].mxu1 }
 0x375   : > { %v3993_v27 = vadd.f32 %v5698_v23, %v7702_v3  ;;  %v3987_v61 = vpop.f32.mrb[45].mxu1 }
 0x376   : > { %v3988_v17 = vadd.f32 %v7702_v3, %v3987_v61 }
 0x377   : > { %4099 = vst [vmem:[%s7706_s28 + $0x68] sm:$0xff] %v3993_v27 }
 0x378   : > { %4098 = vst [vmem:[%s7706_s28 + $0x60] sm:$0xff] %v3988_v17  ;;  %v5701_v20 = vpop.f32.mrb[46].mxu1 }
 0x379   : > { %v4003_v59 = vadd.f32 %v5701_v20, %v7702_v3  ;;  %v3997_v26 = vpop.f32.mrb[47].mxu1 }
 0x37a   : > { %v3998_v19 = vadd.f32 %v7702_v3, %v3997_v26 }
 0x37b   : > { %4101 = vst [vmem:[%s7706_s28 + $0x78] sm:$0xff] %v4003_v59 }
 0x37c   : > { %4100 = vst [vmem:[%s7706_s28 + $0x70] sm:$0xff] %v3998_v19  ;;  %v5704_v28 = vpop.f32.mrb[48].mxu1 }
 0x37d   : > { %v4013_v58 = vadd.f32 %v5704_v28, %v7702_v3  ;;  %v4007_v55 = vpop.f32.mrb[49].mxu1 }
 0x37e   : > { %v4008_v29 = vadd.f32 %v7702_v3, %v4007_v55 }
 0x37f   : > { %4103 = vst [vmem:[%s7706_s28 + $0x88] sm:$0xff] %v4013_v58 }
 0x380   : > { %4102 = vst [vmem:[%s7706_s28 + $0x80] sm:$0xff] %v4008_v29  ;;  %v5707_v56 = vpop.f32.mrb[50].mxu1 }
 0x381   : > { %v4023_v53 = vadd.f32 %v5707_v56, %v7702_v3  ;;  %v4017_v60 = vpop.f32.mrb[51].mxu1 }
 0x382   : > { %v4018_v62 = vadd.f32 %v7702_v3, %v4017_v60 }
 0x383   : > { %4105 = vst [vmem:[%s7706_s28 + $0x98] sm:$0xff] %v4023_v53 }
 0x384   : > { %4104 = vst [vmem:[%s7706_s28 + $0x90] sm:$0xff] %v4018_v62  ;;  %v5710_v54 = vpop.f32.mrb[52].mxu1 }
 0x385   : > { %v4033_v33 = vadd.f32 %v5710_v54, %v7702_v3  ;;  %v4027_v51 = vpop.f32.mrb[53].mxu1 }
 0x386   : > { %v4028_v52 = vadd.f32 %v7702_v3, %v4027_v51 }
 0x387   : > { %4107 = vst [vmem:[%s7706_s28 + $0xa8] sm:$0xff] %v4033_v33 }
 0x388   : > { %4106 = vst [vmem:[%s7706_s28 + $0xa0] sm:$0xff] %v4028_v52  ;;  %v5713_v50 = vpop.f32.mrb[54].mxu1 }
 0x389   : > { %v4043_v49 = vadd.f32 %v5713_v50, %v7702_v3  ;;  %v4037_v35 = vpop.f32.mrb[55].mxu1 }
 0x38a   : > { %v4038_v32 = vadd.f32 %v7702_v3, %v4037_v35 }
 0x38b   : > { %4109 = vst [vmem:[%s7706_s28 + $0xb8] sm:$0xff] %v4043_v49 }
 0x38c   : > { %4108 = vst [vmem:[%s7706_s28 + $0xb0] sm:$0xff] %v4038_v32  ;;  %v5716_v34 = vpop.f32.mrb[56].mxu1 }
 0x38d   : > { %v4053_v45 = vadd.f32 %v5716_v34, %v7702_v3  ;;  %v4047_v44 = vpop.f32.mrb[57].mxu1 }
 0x38e   : > { %v4048_v48 = vadd.f32 %v7702_v3, %v4047_v44 }
 0x38f   : > { %4111 = vst [vmem:[%s7706_s28 + $0xc8] sm:$0xff] %v4053_v45 }
 0x390   : > { %4110 = vst [vmem:[%s7706_s28 + $0xc0] sm:$0xff] %v4048_v48  ;;  %v5719_v47 = vpop.f32.mrb[58].mxu1 }
 0x391   : > { %v4063_v57 = vadd.f32 %v5719_v47, %v7702_v3  ;;  %v4057_v2 = vpop.f32.mrb[59].mxu1 }
 0x392   : > { %v4058_v4 = vadd.f32 %v7702_v3, %v4057_v2 }
 0x393   : > { %4113 = vst [vmem:[%s7706_s28 + $0xd8] sm:$0xff] %v4063_v57 }
 0x394   : > { %4112 = vst [vmem:[%s7706_s28 + $0xd0] sm:$0xff] %v4058_v4  ;;  %v5722_v0 = vpop.f32.mrb[60].mxu1 }
 0x395   : > { %v4073_v42 = vadd.f32 %v5722_v0, %v7702_v3  ;;  %v4067_v6 = vpop.f32.mrb[61].mxu1 }
 0x396   : > { %v4068_v11 = vadd.f32 %v7702_v3, %v4067_v6 }
 0x397   : > { %4115 = vst [vmem:[%s7706_s28 + $0xe8] sm:$0xff] %v4073_v42 }
 0x398   : > { %4114 = vst [vmem:[%s7706_s28 + $0xe0] sm:$0xff] %v4068_v11  ;;  %v5725_v40 = vpop.f32.mrb[62].mxu1 }
 0x399   : > { %v4083_v13 = vadd.f32 %v5725_v40, %v7702_v3  ;;  %v4077_v16 = vpop.f32.mrb[63].mxu1 }
 0x39a   : > { %v4078_v38 = vadd.f32 %v7702_v3, %v4077_v16 }
 0x39b   : > { %4117 = vst [vmem:[%s7706_s28 + $0xf8] sm:$0xff] %v4083_v13 }
 0x39c   : > { %4116 = vst [vmem:[%s7706_s28 + $0xf0] sm:$0xff] %v4078_v38 }
 0x39d   : > { %6351 = shalt.err (!%p6348_p0)
}
 0x39e   : > { %s6352_s16 = scalar_lea.hbm %s7772_s12, 4096  ;;  %s6356_s10 = scalar_lea.hbm %s7831_s5, 8192 }
 0x39f   : > { %p6353_p4 = scmp.ne.s32.totalorder %s7772_s12, %s6352_s16  ;;  %p6357_p12 = scmp.lt.u32.totalorder %s7772_s12, %s7831_s5 }
 0x3a0   : > { %p6358_p1 = scmp.lt.u32.totalorder %s6356_s10, %s6352_s16  ;;  %p6360_p2 = scmp.lt.u32.totalorder %s6352_s16, %s7772_s12 }
 0x3a1   : > { %p6354_p13 = pnand %p6353_p4, %p6648_p5 }
 0x3a2   : > { %p6359_p11 = por %p6358_p1, %p6357_p12 }
 0x3a3   : > { %p6355_p6 = pneg %p6354_p13 }
 0x3a4   : > { %p6361_p8 = por %p6360_p2, %p6359_p11 }
 0x3a6   : > { %p6362_p10 = pnand %p6361_p8, %p6355_p6 }
 0x3a8   : > { %6365 = shalt.err (!%p6362_p10)
}
 0x3a9   : > { %s6438_s28 = smov 128   ;;  %s6439_s30 = smov 8  }
 0x3aa   : > { %6107 = dma.vmem_to_hbm [thread:$0]  (%p6648_p5), %s7774_s11, 4096, %s7772_s12, %s4119_s21, %s6438_s28, %s6438_s28, %s6439_s30  }
 0x3ab PF: > { %s7987_s13 = sld [smem:[#allocation16_spill]]  ;;  %s7988_s6 = sld [smem:[#allocation17_spill]] }
 0x3ac   : > { %p7990_p7 = scmp.ge.s32.totalorder %s6428_s23, 2 }
 0x3b1   : > { %s4150_s29 = sand.u32 1, %s7987_s13   ;;  %p7989_p3 = scmp.ne.s32.totalorder %s7988_s6, 0 }
 0x3b2   : > { %s4151_s14 = scalar_lea.sflag [#allocation4], %s4150_s29 }
 0x3b3   : > { %p6127_p9 = pnand %p7990_p7, %p7989_p3 }
 0x3b5   : > { %6403 = dma.done.wait (!%p6127_p9), %s4151_s14, 4096  }
 0x3b6   : > { %6405 = vsyncadd (!%p6127_p9), %s4151_s14, 4294963200  ;;  %s23_s23 = sadd.s32 1, %s6428_s23   ;;  %s7991_s18 = smov %s6412_s19 }
 0x3b7   : > { %p20_p0 = scmp.ge.s32.totalorder %s23_s23, 4   ;;  %s7992_s19 = smov %s6416_s20 }
 0x3b8   : > { %s7993_s20 = smov %s6660_s9  ;;  %s7994_s21 = smov %s6424_s22 }
 0x3b9   : > { %s7995_s22 = smov %s7997_s24  ;;  %22 = sbr.rel (!%p20_p0) target bundleno = 8 (0x8), region = 112 }
 0x3c0   :  { %4156 = vsyncpa [#allocation3], 1 }
 0x3c1   :  { %4158 = vsyncpa [#allocation3 + $0x1], 1 }
 0x3c2   :  { %4159 = vsyncpa [#allocation6], 1 }
 0x3c3   :  { %4160 = vsyncpa [#allocation9], 1 }
 0x3c4   :  { %4161 = vsyncpa [#allocation4], 1 }
 0x3c5   :  { %4163 = vsyncpa [#allocation4 + $0x1], 1 }

</bundles_post_ra>
